<compile_context>
chip_gen: v7x
topology: tpu7x:2x2x1
jax: 0.10.0
libtpu: 0.0.40
codegen_flags: <defaults>
</compile_context>

<pallas_src>
import jax
import jax.numpy as jnp
from jax import lax
from jax.experimental import pallas as pl
from jax.experimental.pallas import tpu as pltpu

INPUT_SIZE = 784      # 28*28 MNIST
IN_PAD = 896          # 7 * 128 -> lane-dense feature dim
H1 = 512
H2 = 256
LATENT = 128
NEG_SLOPE = 0.2
INV_NEG_SLOPE = 5.0   # 1 / 0.2 folded to a constant multiply


def _round_up(n, m):
    return ((n + m - 1) // m) * m


def _leaky(v):
    # nn.LeakyReLU(negative_slope=0.2)
    return jnp.where(v >= 0, v, NEG_SLOPE * v)


def _inv_leaky(v):
    # lambda x: torch.where(x < 0, x / 0.2, x)  ==  x * 5.0 for x < 0
    return jnp.where(v < 0, v * INV_NEG_SLOPE, v)


def _has_bf16_vpu():
    """v6e / v7x have a bf16 VPU; v5e and older do not."""
    try:
        kind = jax.devices()[0].device_kind.lower()
    except Exception:
        return True
    return not any(t in kind for t in ("v2", "v3", "v4", "v5"))


def _select_batch_tile(B, block_b):
    """Batch tile: multiple of 16, >=2 grid steps when the batch allows it
    (v7x has 2 TensorCores), and <= ~12.5% batch-padding waste."""
    b16 = _round_up(B, 16)
    tb = min(_round_up(block_b, 16), b16)
    if b16 >= 32 and _round_up(B, tb) // tb < 2:
        tb = _round_up(b16 // 2, 16)
    while tb > 16:
        b_pad = _round_up(B, tb)
        if (b_pad - B) * 8 <= b_pad:            # waste <= 1/8 of the padded batch
            break
        tb = max(16, _round_up(tb // 2, 16))
    return tb


def _make_kernel(act_dtype, num_splits, rows_per_split):
    """Full encode/decode chain on one (tb, 896) batch tile.

    Weights are bf16 and pre-oriented so every matmul is a plain (M,K)x(K,N)
    contraction with f32 accumulation on the MXU.  The tile is processed as
    `num_splits` independent row blocks so the LLO scheduler can overlap the
    MXU work of one block with the VPU/EUP epilogue of the other.
    """

    def kernel(x_ref, w1t_ref, w2t_ref, w3c_ref, w2d_ref, w1d_ref, out_ref):
        def mm(a, w_ref):
            return lax.dot_general(a, w_ref[...], (((1,), (0,)), ((), ())),
                                   preferred_element_type=jnp.float32)

        def layer(a, w_ref, act):
            y = act(mm(a, w_ref).astype(act_dtype))
            return y.astype(jnp.bfloat16)           # ready for the next matmul

        for h in range(num_splits):                 # independent half-tiles
            rows = pl.ds(h * rows_per_split, rows_per_split)
            x = x_ref[rows, :]                      # (r, 896) bf16
            e1 = layer(x, w1t_ref, _leaky)          # (r, 512)
            e2 = layer(e1, w2t_ref, _leaky)         # (r, 256)
            d1 = layer(e2, w3c_ref, _inv_leaky)     # (r, 256)  fused W3ᵀ·W3
            d2 = layer(d1, w2d_ref, _inv_leaky)     # (r, 512)
            v = mm(d2, w1d_ref)                     # (r, 896) f32
            # sigmoid(v) = 1 / (1 + exp(-v)); reciprocal on the EUP slot.
            dec = pl.reciprocal(1.0 + jnp.exp(-v), approx=True)
            out_ref[rows, :] = dec.astype(out_ref.dtype)

    return kernel


def tied_autoencoder_forward(x, w1, w2, w3, *, block_b=None):
    """x: (B, 1, 28, 28) or (B, 784) -> decoded (B, 784) float32.

    w1: (512, 784), w2: (256, 512), w3: (128, 256)  -- PyTorch Linear layout.
    """
    x2d = x.reshape(x.shape[0], -1).astype(jnp.float32)
    B = x2d.shape[0]
    assert x2d.shape[1] == INPUT_SIZE

    bf16_vpu = _has_bf16_vpu()
    if block_b is None:
        block_b = 512 if bf16_vpu else 128          # v6e/v7x vs v5e-and-older
    act_dtype = jnp.bfloat16 if bf16_vpu else jnp.float32

    tb = _select_batch_tile(B, block_b)
    b_pad = _round_up(B, tb)
    num_tiles = b_pad // tb
    num_splits = 2 if (tb >= 64 and tb % 32 == 0) else 1
    rows_per_split = tb // num_splits

    # batch padded to a tile multiple, features zero-padded 784 -> 896,
    # streamed as bf16 (halves HBM traffic and input double-buffer VMEM).
    x_pad = jnp.pad(x2d, ((0, b_pad - B), (0, IN_PAD - INPUT_SIZE)))
    x_pad = x_pad.astype(jnp.bfloat16)

    # weights: zero-pad W1's in-feature axis, cast to bf16, pre-orient both
    # directions, and fuse the latent pair (no nonlinearity on `enc`).
    cdt = jnp.bfloat16
    w1f = jnp.pad(w1.astype(jnp.float32), ((0, 0), (0, IN_PAD - INPUT_SIZE)))
    w2f = w2.astype(jnp.float32)
    w3f = w3.astype(jnp.float32)
    w1t = w1f.T.astype(cdt)              # (896, 512)  encoder layer 1
    w2t = w2f.T.astype(cdt)              # (512, 256)  encoder layer 2
    w3c = (w3f.T @ w3f).astype(cdt)      # (256, 256)  fused latent enc->dec
    w2d = w2f.astype(cdt)                # (256, 512)  decoder layer 2
    w1d = w1f.astype(cdt)                # (512, 896)  decoder layer 3
    weights = (w1t, w2t, w3c, w2d, w1d)

    def weight_spec(a):
        # whole weight resident in VMEM; block index independent of the grid
        return pl.BlockSpec(a.shape, lambda i: (0, 0), memory_space=pltpu.VMEM)

    macs_per_row = IN_PAD * H1 + H1 * H2 + H2 * H2 + H2 * H1 + H1 * IN_PAD
    flops = 2 * b_pad * macs_per_row
    bytes_accessed = 2 * b_pad * IN_PAD * 2 + sum(w.size for w in weights) * 2

    kernel = _make_kernel(act_dtype, num_splits, rows_per_split)

    out_pad = pl.pallas_call(
        kernel,
        out_shape=jax.ShapeDtypeStruct((b_pad, IN_PAD), jnp.bfloat16),
        grid=(num_tiles,),
        in_specs=[
            pl.BlockSpec((tb, IN_PAD), lambda i: (i, 0),
                         memory_space=pltpu.VMEM),
            *[weight_spec(w) for w in weights],
        ],
        out_specs=pl.BlockSpec((tb, IN_PAD), lambda i: (i, 0),
                               memory_space=pltpu.VMEM),
        compiler_params=pltpu.CompilerParams(
            dimension_semantics=("parallel",),      # shard batch across TCs (v7x)
            vmem_limit_bytes=32 << 20,
        ),
        cost_estimate=pl.CostEstimate(
            flops=flops,
            transcendentals=b_pad * IN_PAD,         # one exp per output element
            bytes_accessed=bytes_accessed,
        ),
    )(x_pad, *weights)

    # drop padded batch rows / feature lanes (padded lanes hold sigmoid(0)=0.5)
    return out_pad[:B, :INPUT_SIZE].astype(jnp.float32)


def xavier_uniform(key, out_f, in_f):
    bound = (6.0 / (in_f + out_f)) ** 0.5
    return jax.random.uniform(key, (out_f, in_f), jnp.float32, -bound, bound)


def reference_forward(x, w1, w2, w3):
    """Pure-JAX f32 reference with the same math as the PyTorch module."""
    x = x.reshape(x.shape[0], -1).astype(jnp.float32)
    e1 = _leaky(x @ w1.T)
    e2 = _leaky(e1 @ w2.T)
    enc = e2 @ w3.T
    d1 = _inv_leaky(enc @ w3)
    d2 = _inv_leaky(d1 @ w2)
    return jax.nn.sigmoid(d2 @ w1)


if __name__ == "__main__":
    key = jax.random.PRNGKey(0)
    kx, k1, k2, k3 = jax.random.split(key, 4)

    w1 = xavier_uniform(k1, H1, INPUT_SIZE)   # (512, 784)
    w2 = xavier_uniform(k2, H2, H1)           # (256, 512)
    w3 = xavier_uniform(k3, LATENT, H2)       # (128, 256)

    # The kernel consumes bf16 inputs/weights (f32 MXU accumulation) and also
    # rounds intermediate activations + the output to bf16, so the reference
    # uses bf16-rounded x / weights in otherwise-f32 math and the tolerance is
    # sized for the extra activation/output rounding of the kernel.
    q = lambda a: a.astype(jnp.bfloat16).astype(jnp.float32)

    for B in (8, 128):    # tiny single-tile case + multi-tile / split-tile case
        x = jax.random.uniform(kx, (B, 1, 28, 28), jnp.float32)  # MNIST-like NCHW
        out = jax.block_until_ready(tied_autoencoder_forward(x, w1, w2, w3))
        ref = reference_forward(q(x), q(w1), q(w2), q(w3))

        assert out.shape == (B, INPUT_SIZE)
        assert bool(jnp.all(jnp.isfinite(out)))
        assert bool(jnp.allclose(out, ref, rtol=3e-2, atol=3e-2)), (
            f"mismatch at B={B}: max|d|={float(jnp.max(jnp.abs(out - ref)))}")

    print("KERNEL_OK")
</pallas_src>

<mosaic_0001>
module attributes {stable_mosaic.version = 11 : i64} {
  func.func @kernel(%arg0: i32, %arg1: memref<16x896xbf16, #tpu.memory_space<vmem>>, %arg2: memref<896x512xbf16, #tpu.memory_space<vmem>>, %arg3: memref<512x256xbf16, #tpu.memory_space<vmem>>, %arg4: memref<256x256xbf16, #tpu.memory_space<vmem>>, %arg5: memref<256x512xbf16, #tpu.memory_space<vmem>>, %arg6: memref<512x896xbf16, #tpu.memory_space<vmem>>, %arg7: memref<16x896xbf16, #tpu.memory_space<vmem>>) attributes {dimension_semantics = [#tpu.dimension_semantics<parallel>], iteration_bounds = array<i64: 1>, scalar_prefetch = 0 : i64, scratch_operands = 0 : i64, tpu.core_type = #tpu.core_type<tc>, window_params = [{transform_indices = @transform_0, window_bounds = array<i64: 16, 896>}, {pipeline_mode = #tpu.pipeline_mode<synchronous>, transform_indices = @transform_1, window_bounds = array<i64: 896, 512>}, {pipeline_mode = #tpu.pipeline_mode<synchronous>, transform_indices = @transform_2, window_bounds = array<i64: 512, 256>}, {pipeline_mode = #tpu.pipeline_mode<synchronous>, transform_indices = @transform_3, window_bounds = array<i64: 256, 256>}, {pipeline_mode = #tpu.pipeline_mode<synchronous>, transform_indices = @transform_4, window_bounds = array<i64: 256, 512>}, {pipeline_mode = #tpu.pipeline_mode<synchronous>, transform_indices = @transform_5, window_bounds = array<i64: 512, 896>}, {transform_indices = @transform_6, window_bounds = array<i64: 16, 896>}]} {
    %c0 = arith.constant 0 : index
    %c0_0 = arith.constant 0 : index
    %0 = vector.load %arg1[%c0, %c0_0] : memref<16x896xbf16, #tpu.memory_space<vmem>>, vector<16x896xbf16>
    %c0_1 = arith.constant 0 : index
    %c0_2 = arith.constant 0 : index
    %1 = vector.load %arg2[%c0_1, %c0_2] : memref<896x512xbf16, #tpu.memory_space<vmem>>, vector<896x512xbf16>
    %cst = arith.constant dense<0.000000e+00> : vector<16x512xf32>
    %2 = tpu.matmul %0, %1, %cst {dimension_numbers = #tpu.dot_dimension_numbers<[1], [0], [0], [1], [0, 0, 1, 1], [], []>} : vector<16x896xbf16>, vector<896x512xbf16>, vector<16x512xf32> -> vector<16x512xf32>
    %3 = arith.truncf %2 : vector<16x512xf32> to vector<16x512xbf16>
    %cst_3 = arith.constant 0.000000e+00 : bf16
    %4 = vector.broadcast %cst_3 : bf16 to vector<16x512xbf16>
    %5 = arith.cmpf oge, %3, %4 : vector<16x512xbf16>
    %cst_4 = arith.constant 2.001950e-01 : bf16
    %6 = vector.broadcast %cst_4 : bf16 to vector<16x512xbf16>
    %7 = arith.mulf %6, %3 : vector<16x512xbf16>
    %8 = arith.select %5, %3, %7 : vector<16x512xi1>, vector<16x512xbf16>
    %c0_5 = arith.constant 0 : index
    %c0_6 = arith.constant 0 : index
    %9 = vector.load %arg3[%c0_5, %c0_6] : memref<512x256xbf16, #tpu.memory_space<vmem>>, vector<512x256xbf16>
    %cst_7 = arith.constant dense<0.000000e+00> : vector<16x256xf32>
    %10 = tpu.matmul %8, %9, %cst_7 {dimension_numbers = #tpu.dot_dimension_numbers<[1], [0], [0], [1], [0, 0, 1, 1], [], []>} : vector<16x512xbf16>, vector<512x256xbf16>, vector<16x256xf32> -> vector<16x256xf32>
    %11 = arith.truncf %10 : vector<16x256xf32> to vector<16x256xbf16>
    %cst_8 = arith.constant 0.000000e+00 : bf16
    %12 = vector.broadcast %cst_8 : bf16 to vector<16x256xbf16>
    %13 = arith.cmpf oge, %11, %12 : vector<16x256xbf16>
    %cst_9 = arith.constant 2.001950e-01 : bf16
    %14 = vector.broadcast %cst_9 : bf16 to vector<16x256xbf16>
    %15 = arith.mulf %14, %11 : vector<16x256xbf16>
    %16 = arith.select %13, %11, %15 : vector<16x256xi1>, vector<16x256xbf16>
    %c0_10 = arith.constant 0 : index
    %c0_11 = arith.constant 0 : index
    %17 = vector.load %arg4[%c0_10, %c0_11] : memref<256x256xbf16, #tpu.memory_space<vmem>>, vector<256x256xbf16>
    %cst_12 = arith.constant dense<0.000000e+00> : vector<16x256xf32>
    %18 = tpu.matmul %16, %17, %cst_12 {dimension_numbers = #tpu.dot_dimension_numbers<[1], [0], [0], [1], [0, 0, 1, 1], [], []>} : vector<16x256xbf16>, vector<256x256xbf16>, vector<16x256xf32> -> vector<16x256xf32>
    %19 = arith.truncf %18 : vector<16x256xf32> to vector<16x256xbf16>
    %cst_13 = arith.constant 0.000000e+00 : bf16
    %20 = vector.broadcast %cst_13 : bf16 to vector<16x256xbf16>
    %21 = arith.cmpf olt, %19, %20 : vector<16x256xbf16>
    %cst_14 = arith.constant 5.000000e+00 : bf16
    %22 = vector.broadcast %cst_14 : bf16 to vector<16x256xbf16>
    %23 = arith.mulf %19, %22 : vector<16x256xbf16>
    %24 = arith.select %21, %23, %19 : vector<16x256xi1>, vector<16x256xbf16>
    %c0_15 = arith.constant 0 : index
    %c0_16 = arith.constant 0 : index
    %25 = vector.load %arg5[%c0_15, %c0_16] : memref<256x512xbf16, #tpu.memory_space<vmem>>, vector<256x512xbf16>
    %cst_17 = arith.constant dense<0.000000e+00> : vector<16x512xf32>
    %26 = tpu.matmul %24, %25, %cst_17 {dimension_numbers = #tpu.dot_dimension_numbers<[1], [0], [0], [1], [0, 0, 1, 1], [], []>} : vector<16x256xbf16>, vector<256x512xbf16>, vector<16x512xf32> -> vector<16x512xf32>
    %27 = arith.truncf %26 : vector<16x512xf32> to vector<16x512xbf16>
    %cst_18 = arith.constant 0.000000e+00 : bf16
    %28 = vector.broadcast %cst_18 : bf16 to vector<16x512xbf16>
    %29 = arith.cmpf olt, %27, %28 : vector<16x512xbf16>
    %cst_19 = arith.constant 5.000000e+00 : bf16
    %30 = vector.broadcast %cst_19 : bf16 to vector<16x512xbf16>
    %31 = arith.mulf %27, %30 : vector<16x512xbf16>
    %32 = arith.select %29, %31, %27 : vector<16x512xi1>, vector<16x512xbf16>
    %c0_20 = arith.constant 0 : index
    %c0_21 = arith.constant 0 : index
    %33 = vector.load %arg6[%c0_20, %c0_21] : memref<512x896xbf16, #tpu.memory_space<vmem>>, vector<512x896xbf16>
    %cst_22 = arith.constant dense<0.000000e+00> : vector<16x896xf32>
    %34 = tpu.matmul %32, %33, %cst_22 {dimension_numbers = #tpu.dot_dimension_numbers<[1], [0], [0], [1], [0, 0, 1, 1], [], []>} : vector<16x512xbf16>, vector<512x896xbf16>, vector<16x896xf32> -> vector<16x896xf32>
    %cst_23 = arith.constant 0.000000e+00 : f32
    %35 = vector.broadcast %cst_23 : f32 to vector<16x896xf32>
    %36 = arith.subf %35, %34 : vector<16x896xf32>
    %37 = math.exp %36 : vector<16x896xf32>
    %cst_24 = arith.constant 1.000000e+00 : f32
    %38 = vector.broadcast %cst_24 : f32 to vector<16x896xf32>
    %39 = arith.addf %38, %37 : vector<16x896xf32>
    %40 = tpu.reciprocal %39 {approx = true} : vector<16x896xf32> -> vector<16x896xf32>
    %41 = arith.truncf %40 : vector<16x896xf32> to vector<16x896xbf16>
    %c0_25 = arith.constant 0 : index
    %c0_26 = arith.constant 0 : index
    %42 = vector.load %arg7[%c0_25, %c0_26] : memref<16x896xbf16, #tpu.memory_space<vmem>>, vector<16x896xbf16>
    tpu.vector_store %arg7[%c0_25, %c0_26], %41 {strides = array<i32>} : memref<16x896xbf16, #tpu.memory_space<vmem>>, vector<16x896xbf16>,
    return
  }
  func.func @transform_0(%arg0: i32) -> (i32, i32) {
    %c0_i32 = arith.constant 0 : i32
    %c0_i32_0 = arith.constant 0 : i32
    return %arg0, %c0_i32 : i32, i32
  }
  func.func @transform_1(%arg0: i32) -> (i32, i32) {
    %c0_i32 = arith.constant 0 : i32
    %c0_i32_0 = arith.constant 0 : i32
    %c0_i32_1 = arith.constant 0 : i32
    return %c0_i32, %c0_i32_0 : i32, i32
  }
  func.func @transform_2(%arg0: i32) -> (i32, i32) {
    %c0_i32 = arith.constant 0 : i32
    %c0_i32_0 = arith.constant 0 : i32
    %c0_i32_1 = arith.constant 0 : i32
    return %c0_i32, %c0_i32_0 : i32, i32
  }
  func.func @transform_3(%arg0: i32) -> (i32, i32) {
    %c0_i32 = arith.constant 0 : i32
    %c0_i32_0 = arith.constant 0 : i32
    %c0_i32_1 = arith.constant 0 : i32
    return %c0_i32, %c0_i32_0 : i32, i32
  }
  func.func @transform_4(%arg0: i32) -> (i32, i32) {
    %c0_i32 = arith.constant 0 : i32
    %c0_i32_0 = arith.constant 0 : i32
    %c0_i32_1 = arith.constant 0 : i32
    return %c0_i32, %c0_i32_0 : i32, i32
  }
  func.func @transform_5(%arg0: i32) -> (i32, i32) {
    %c0_i32 = arith.constant 0 : i32
    %c0_i32_0 = arith.constant 0 : i32
    %c0_i32_1 = arith.constant 0 : i32
    return %c0_i32, %c0_i32_0 : i32, i32
  }
  func.func @transform_6(%arg0: i32) -> (i32, i32) {
    %c0_i32 = arith.constant 0 : i32
    %c0_i32_0 = arith.constant 0 : i32
    return %arg0, %c0_i32 : i32, i32
  }
}

</mosaic_0001>

<bundles_post_ra>
// kernel: tpu_custom_call.1
= control target key start
LH: loop header
LB: loop body
LE: loop exit
PB: predicated region body
PF: predicated region fallthrough
CT: control target
= control target key end

     0   :  { %11 = vsyncpa [#allocation3], 0  ;;  %s6997_s0 = inlined_call_operand.hbm [shape: bf16[16,896], index: 0, kind: input, shape index: {}]   ;;  %s6998_s1 = inlined_call_operand.hbm [shape: bf16[896,512], index: 1, kind: input, shape index: {}]   ;;  %s6999_s2 = inlined_call_operand.hbm [shape: bf16[512,256], index: 2, kind: input, shape index: {}]   ;;  %s7000_s3 = inlined_call_operand.hbm [shape: bf16[256,256], index: 3, kind: input, shape index: {}]   ;;  %s7001_s4 = inlined_call_operand.hbm [shape: bf16[256,512], index: 4, kind: input, shape index: {}]   ;;  %s7002_s5 = inlined_call_operand.hbm [shape: bf16[512,896], index: 5, kind: input, shape index: {}]   ;;  %s7003_s6 = inlined_call_operand.hbm [shape: bf16[16,896], index: 6, kind: output, shape index: {}]  }
   0x1   :  { %12 = vsyncpa [#allocation6], 0 }
   0x2   :  { %13 = vsyncpa [#allocation9], 0 }
   0x3   :  { %14 = vsyncpa [#allocation12], 0 }
   0x4   :  { %15 = vsyncpa [#allocation4], 0  ;;  %s6809_s21 = smov [#allocation5]   ;;  %s6645_s25 = scalar_lea.hbm %s6998_s1, 28672 }
   0x5   :  { %s33_s22 = sshll.u32 %s6809_s21, 4  ;;  %p6646_p0 = scmp.ne.s32.totalorder %s6998_s1, %s6645_s25  ;;  %s34_s22 = int_to_ptr.vmem [resolvable:$true] %s33_s22 }
   0x6   :  { %p6649_p1 = scmp.lt.u32.totalorder %s6645_s25, %s6998_s1 }
   0x8   :  { %p6651_p2 = pnand %p6649_p1, %p6646_p0 }
   0xa   :  { %6654 = shalt.err (!%p6651_p2)
}
   0xb   :  { %s6655_s30 = scalar_lea.vmem %s34_s22, 28672  ;;  %p6660_p4 = scmp.lt.s32.totalorder %s34_s22, %s34_s22 }
   0xc   :  { %p6656_p3 = scmp.ne.s32.totalorder %s34_s22, %s6655_s30  ;;  %p6661_p5 = scmp.lt.s32.totalorder %s6655_s30, %s6655_s30 }
   0xe   :  { %p6662_p6 = por %p6661_p5, %p6660_p4 }
  0x10   :  { %p6663_p7 = pnand %p6662_p6, %p6656_p3 }
  0x12   :  { %6666 = shalt.err (!%p6663_p7)
}
  0x13   :  { %s6810_s7 = smov 256   ;;  %s6811_s8 = smov 16  }
  0x14   :  { %39 = dma.hbm_to_vmem [thread:$0]  %s6998_s1, 28672, %s34_s22, [#allocation6], %s6810_s7, %s6810_s7, %s6811_s8  }
  0x15   :  { %s6812_s11 = smov [#allocation8]   ;;  %s6813_s13 = smov [#allocation2]  }
  0x16   :  { %s57_s12 = sshll.u32 %s6812_s11, 4  ;;  %s21_s14 = sshll.u32 %s6813_s13, 4  ;;  %s58_s12 = int_to_ptr.vmem [resolvable:$true] %s57_s12  ;;  %s22_s14 = int_to_ptr.vmem [resolvable:$true] %s21_s14 }
  0x17   :  { %s6667_s17 = scalar_lea.hbm %s7000_s3, 4096 }
  0x18   :  { %p6668_p8 = scmp.ne.s32.totalorder %s7000_s3, %s6667_s17  ;;  %p6671_p9 = scmp.lt.u32.totalorder %s6667_s17, %s7000_s3 }
  0x1a   :  { %p6673_p10 = pnand %p6671_p9, %p6668_p8 }
  0x1c   :  { %6676 = shalt.err (!%p6673_p10)
}
  0x1d   :  { %s6677_s1 = scalar_lea.vmem %s58_s12, 4096  ;;  %p6682_p12 = scmp.lt.s32.totalorder %s58_s12, %s58_s12 }
  0x1e   :  { %p6678_p11 = scmp.ne.s32.totalorder %s58_s12, %s6677_s1  ;;  %p6683_p13 = scmp.lt.s32.totalorder %s6677_s1, %s6677_s1 }
  0x20   :  { %p6684_p0 = por %p6683_p13, %p6682_p12 }
  0x22   :  { %p6685_p1 = pnand %p6684_p0, %p6678_p11 }
  0x24   :  { %6688 = shalt.err (!%p6685_p1)
}
  0x25   :  { %s6814_s22 = smov 128   ;;  %s6815_s23 = smov 8  }
  0x26   :  { %63 = dma.hbm_to_vmem [thread:$0]  %s7000_s3, 4096, %s58_s12, [#allocation9], %s6814_s22, %s6814_s22, %s6815_s23  }
  0x27   :  { %s6689_s28 = scalar_lea.hbm %s6997_s0, 896 }
  0x28   :  { %p6690_p2 = scmp.ne.s32.totalorder %s6997_s0, %s6689_s28  ;;  %p6693_p3 = scmp.lt.u32.totalorder %s6689_s28, %s6997_s0 }
  0x2a   :  { %p6695_p4 = pnand %p6693_p3, %p6690_p2 }
  0x2c   :  { %6698 = shalt.err (!%p6695_p4)
}
  0x2d   :  { %s6699_s11 = scalar_lea.vmem %s22_s14, 896  ;;  %p6704_p6 = scmp.lt.s32.totalorder %s22_s14, %s22_s14 }
  0x2e   :  { %p6700_p5 = scmp.ne.s32.totalorder %s22_s14, %s6699_s11  ;;  %p6705_p7 = scmp.lt.s32.totalorder %s6699_s11, %s6699_s11 }
  0x30   :  { %p6706_p8 = por %p6705_p7, %p6704_p6 }
  0x32   :  { %p6707_p9 = pnand %p6706_p8, %p6700_p5 }
  0x34   :  { %6710 = shalt.err (!%p6707_p9)
}
  0x35   :  { %s6816_s3 = smov 448   ;;  %s6817_s12 = smov 28  }
  0x36   :  { %27 = dma.hbm_to_vmem [thread:$0]  %s6997_s0, 896, %s22_s14, [#allocation3], %s6816_s3, %s6816_s3, %s6817_s12  }
  0x37   :  { %s6818_s16 = smov [#allocation7]   ;;  %s6819_s18 = smov [#allocation10]  }
  0x38   :  { %s45_s17 = sshll.u32 %s6818_s16, 4  ;;  %s69_s19 = sshll.u32 %s6819_s18, 4  ;;  %s46_s17 = int_to_ptr.vmem [resolvable:$true] %s45_s17  ;;  %s70_s19 = int_to_ptr.vmem [resolvable:$true] %s69_s19 }
  0x39   :  { %s6711_s1 = scalar_lea.hbm %s6999_s2, 8192 }
  0x3a   :  { %p6712_p10 = scmp.ne.s32.totalorder %s6999_s2, %s6711_s1  ;;  %p6715_p11 = scmp.lt.u32.totalorder %s6711_s1, %s6999_s2 }
  0x3c   :  { %p6717_p12 = pnand %p6715_p11, %p6712_p10 }
  0x3e   :  { %6720 = shalt.err (!%p6717_p12)
}
  0x3f   :  { %s6721_s0 = scalar_lea.vmem %s46_s17, 8192  ;;  %p6726_p0 = scmp.lt.s32.totalorder %s46_s17, %s46_s17 }
  0x40   :  { %p6722_p13 = scmp.ne.s32.totalorder %s46_s17, %s6721_s0  ;;  %p6727_p1 = scmp.lt.s32.totalorder %s6721_s0, %s6721_s0 }
  0x42   :  { %p6728_p2 = por %p6727_p1, %p6726_p0 }
  0x44   :  { %p6729_p3 = pnand %p6728_p2, %p6722_p13 }
  0x46   :  { %6732 = shalt.err (!%p6729_p3)
}
  0x47   :  { %51 = dma.hbm_to_vmem [thread:$0]  %s6999_s2, 8192, %s46_s17, [#allocation6], %s6814_s22, %s6814_s22, %s6815_s23  }
  0x48   :  { %s6733_s9 = scalar_lea.hbm %s7001_s4, 8192 }
  0x49   :  { %p6734_p4 = scmp.ne.s32.totalorder %s7001_s4, %s6733_s9  ;;  %p6737_p5 = scmp.lt.u32.totalorder %s6733_s9, %s7001_s4 }
  0x4b   :  { %p6739_p6 = pnand %p6737_p5, %p6734_p4 }
  0x4d   :  { %6742 = shalt.err (!%p6739_p6)
}
  0x4e   :  { %s6743_s16 = scalar_lea.vmem %s70_s19, 8192  ;;  %p6748_p8 = scmp.lt.s32.totalorder %s70_s19, %s70_s19 }
  0x4f   :  { %p6744_p7 = scmp.ne.s32.totalorder %s70_s19, %s6743_s16  ;;  %p6749_p9 = scmp.lt.s32.totalorder %s6743_s16, %s6743_s16 }
  0x51   :  { %p6750_p10 = por %p6749_p9, %p6748_p8 }
  0x53   :  { %p6751_p11 = pnand %p6750_p10, %p6744_p7 }
  0x55   :  { %6754 = shalt.err (!%p6751_p11)
}
  0x56   :  { %75 = dma.hbm_to_vmem [thread:$0]  %s7001_s4, 8192, %s70_s19, [#allocation9], %s6810_s7, %s6810_s7, %s6811_s8  }
  0x57   :  { %s6820_s23 = smov [#allocation11]   ;;  %s6755_s21 = scalar_lea.hbm %s7002_s5, 28672 }
  0x58   :  { %s81_s17 = sshll.u32 %s6820_s23, 4  ;;  %p6756_p12 = scmp.ne.s32.totalorder %s7002_s5, %s6755_s21  ;;  %s82_s17 = int_to_ptr.vmem [resolvable:$true] %s81_s17 }
  0x59   :  { %p6759_p13 = scmp.lt.u32.totalorder %s6755_s21, %s7002_s5 }
  0x5b   :  { %p6761_p0 = pnand %p6759_p13, %p6756_p12 }
  0x5d   :  { %6764 = shalt.err (!%p6761_p0)
}
  0x5e   :  { %s6765_s27 = scalar_lea.vmem %s82_s17, 28672  ;;  %p6770_p2 = scmp.lt.s32.totalorder %s82_s17, %s82_s17 }
  0x5f   :  { %p6766_p1 = scmp.ne.s32.totalorder %s82_s17, %s6765_s27  ;;  %p6771_p3 = scmp.lt.s32.totalorder %s6765_s27, %s6765_s27 }
  0x61   :  { %p6772_p4 = por %p6771_p3, %p6770_p2 }
  0x63   :  { %p6773_p5 = pnand %p6772_p4, %p6766_p1 }
  0x65   :  { %6776 = shalt.err (!%p6773_p5)
}
  0x66   :  { %87 = dma.hbm_to_vmem [thread:$0]  %s7002_s5, 28672, %s82_s17, [#allocation12], %s6816_s3, %s6816_s3, %s6817_s12  }
  0x67   :  { %6799 = dma.done.wait [#allocation3], 896  }
  0x68   :  { %6800 = vsyncadd [#allocation3], 4294966400 }
  0x69   :  { %6801 = dma.done.wait [#allocation6], 36864  }
  0x6a   :  { %6802 = vsyncadd [#allocation6], 4294930432 }
  0x6b   :  { %6803 = dma.done.wait [#allocation9], 12288  }
  0x6c   :  { %6804 = vsyncadd [#allocation9], 4294955008 }
  0x6d   :  { %6805 = dma.done.wait [#allocation12], 28672  }
  0x6e   :  { %6806 = vsyncadd [#allocation12], 4294938624  ;;  %v5683_v0 = vld [vmem:[#allocation5 + $0x4] ss:$16 sps:$4 sm:$0xff]   ;;  %v5685_v1 = vld [vmem:[#allocation5 + $0xc] ss:$16 sps:$4 sm:$0xff]  }
  0x6f   :  { %1497 = vmatprep.subr.bf16.mxu0 %v5683_v0  ;;  %v5687_v2 = vld [vmem:[#allocation5] ss:$16 sps:$4 sm:$0xff]   ;;  %v5688_v3 = vld [vmem:[#allocation5 + $0x8] ss:$16 sps:$4 sm:$0xff]   ;;  %1669 = vmatprep.subr.bf16.mxu1 %v5685_v1  ;;  %v5689_v4 = vld [vmem:[#allocation5 + $0x24] ss:$16 sps:$4 sm:$0xff]  }
  0x70   :  { %1498 = vmatpush1.bf16.msra.mxu0 %v5687_v2  ;;  %1670 = vmatpush1.bf16.msra.mxu1 %v5688_v3  ;;  %v5691_v5 = vld [vmem:[#allocation5 + $0x2c] ss:$16 sps:$4 sm:$0xff]   ;;  %v5693_v6 = vld [vmem:[#allocation5 + $0x20] ss:$16 sps:$4 sm:$0xff]   ;;  %v5694_v7 = vld [vmem:[#allocation5 + $0x28] ss:$16 sps:$4 sm:$0xff]  }
  0x71   :  { %1499 = vmatprep.subr.bf16.mxu0 %v5689_v4  ;;  %1671 = vmatprep.subr.bf16.mxu1 %v5691_v5  ;;  %v5695_v8 = vld [vmem:[#allocation5 + $0x44] ss:$16 sps:$4 sm:$0xff]   ;;  %v5697_v9 = vld [vmem:[#allocation5 + $0x4c] ss:$16 sps:$4 sm:$0xff]   ;;  %v5699_v10 = vld [vmem:[#allocation5 + $0x40] ss:$16 sps:$4 sm:$0xff]  }
  0x72   :  { %v5700_v11 = vld [vmem:[#allocation5 + $0x48] ss:$16 sps:$4 sm:$0xff]   ;;  %v5701_v12 = vld [vmem:[#allocation5 + $0x64] ss:$16 sps:$4 sm:$0xff]   ;;  %v5703_v13 = vld [vmem:[#allocation5 + $0x6c] ss:$16 sps:$4 sm:$0xff]  }
  0x73   :  { %v5705_v14 = vld [vmem:[#allocation5 + $0x60] ss:$16 sps:$4 sm:$0xff]   ;;  %v5706_v15 = vld [vmem:[#allocation5 + $0x68] ss:$16 sps:$4 sm:$0xff]   ;;  %v5707_v16 = vld [vmem:[#allocation5 + $0x84] ss:$16 sps:$4 sm:$0xff]  }
  0x74   :  { %1500 = vmatpush1.bf16.msra.mxu0 %v5693_v6  ;;  %1672 = vmatpush1.bf16.msra.mxu1 %v5694_v7  ;;  %v5709_v17 = vld [vmem:[#allocation5 + $0x8c] ss:$16 sps:$4 sm:$0xff]   ;;  %v5711_v18 = vld [vmem:[#allocation5 + $0x80] ss:$16 sps:$4 sm:$0xff]   ;;  %v5712_v19 = vld [vmem:[#allocation5 + $0x88] ss:$16 sps:$4 sm:$0xff]  }
  0x75   :  { %1501 = vmatprep.subr.bf16.mxu0 %v5695_v8  ;;  %1673 = vmatprep.subr.bf16.mxu1 %v5697_v9  ;;  %v5713_v20 = vld [vmem:[#allocation5 + $0xa4] ss:$16 sps:$4 sm:$0xff]   ;;  %v5715_v21 = vld [vmem:[#allocation5 + $0xac] ss:$16 sps:$4 sm:$0xff]   ;;  %v5717_v22 = vld [vmem:[#allocation5 + $0xa0] ss:$16 sps:$4 sm:$0xff]  }
  0x76   :  { %v5718_v23 = vld [vmem:[#allocation5 + $0xa8] ss:$16 sps:$4 sm:$0xff]   ;;  %v5719_v24 = vld [vmem:[#allocation5 + $0xc4] ss:$16 sps:$4 sm:$0xff]   ;;  %v5721_v25 = vld [vmem:[#allocation5 + $0xcc] ss:$16 sps:$4 sm:$0xff]  }
  0x77   :  { %v5723_v26 = vld [vmem:[#allocation5 + $0xc0] ss:$16 sps:$4 sm:$0xff]   ;;  %v5724_v27 = vld [vmem:[#allocation5 + $0xc8] ss:$16 sps:$4 sm:$0xff]   ;;  %v5725_v28 = vld [vmem:[#allocation5 + $0xe4] ss:$16 sps:$4 sm:$0xff]  }
  0x78   :  { %1502 = vmatpush1.bf16.msra.mxu0 %v5699_v10  ;;  %1674 = vmatpush1.bf16.msra.mxu1 %v5700_v11  ;;  %v5727_v29 = vld [vmem:[#allocation5 + $0xec] ss:$16 sps:$4 sm:$0xff]   ;;  %v5729_v30 = vld [vmem:[#allocation5 + $0xe0] ss:$16 sps:$4 sm:$0xff]   ;;  %v5730_v31 = vld [vmem:[#allocation5 + $0xe8] ss:$16 sps:$4 sm:$0xff]  }
  0x79   :  { %1503 = vmatprep.subr.bf16.mxu0 %v5701_v12  ;;  %1675 = vmatprep.subr.bf16.mxu1 %v5703_v13  ;;  %v5731_v32 = vld [vmem:[#allocation5 + $0x104] ss:$16 sps:$4 sm:$0xff]   ;;  %v5733_v33 = vld [vmem:[#allocation5 + $0x10c] ss:$16 sps:$4 sm:$0xff]   ;;  %v5735_v34 = vld [vmem:[#allocation5 + $0x100] ss:$16 sps:$4 sm:$0xff]  }
  0x7a   :  { %v5736_v35 = vld [vmem:[#allocation5 + $0x108] ss:$16 sps:$4 sm:$0xff]   ;;  %v5737_v36 = vld [vmem:[#allocation5 + $0x124] ss:$16 sps:$4 sm:$0xff]   ;;  %v5739_v37 = vld [vmem:[#allocation5 + $0x12c] ss:$16 sps:$4 sm:$0xff]  }
  0x7b   :  { %v5741_v38 = vld [vmem:[#allocation5 + $0x120] ss:$16 sps:$4 sm:$0xff]   ;;  %v5742_v39 = vld [vmem:[#allocation5 + $0x128] ss:$16 sps:$4 sm:$0xff]   ;;  %v5743_v40 = vld [vmem:[#allocation5 + $0x144] ss:$16 sps:$4 sm:$0xff]  }
  0x7c   :  { %1504 = vmatpush1.bf16.msra.mxu0 %v5705_v14  ;;  %1676 = vmatpush1.bf16.msra.mxu1 %v5706_v15  ;;  %v5745_v41 = vld [vmem:[#allocation5 + $0x14c] ss:$16 sps:$4 sm:$0xff]   ;;  %v5747_v42 = vld [vmem:[#allocation5 + $0x140] ss:$16 sps:$4 sm:$0xff]   ;;  %v5748_v43 = vld [vmem:[#allocation5 + $0x148] ss:$16 sps:$4 sm:$0xff]  }
  0x7d   :  { %1505 = vmatprep.subr.bf16.mxu0 %v5707_v16  ;;  %1677 = vmatprep.subr.bf16.mxu1 %v5709_v17  ;;  %v5749_v44 = vld [vmem:[#allocation5 + $0x164] ss:$16 sps:$4 sm:$0xff]   ;;  %v5751_v45 = vld [vmem:[#allocation5 + $0x16c] ss:$16 sps:$4 sm:$0xff]   ;;  %v5753_v46 = vld [vmem:[#allocation5 + $0x160] ss:$16 sps:$4 sm:$0xff]  }
  0x7e   :  { %v5754_v47 = vld [vmem:[#allocation5 + $0x168] ss:$16 sps:$4 sm:$0xff]   ;;  %v5755_v49 = vld [vmem:[#allocation5 + $0x184] ss:$16 sps:$4 sm:$0xff]   ;;  %v5757_v50 = vld [vmem:[#allocation5 + $0x18c] ss:$16 sps:$4 sm:$0xff]  }
  0x7f   :  { %v5781_v48 = vld [vmem:[#allocation2 + $0x4] ss:$28 sps:$4 sm:$0xff]   ;;  %v5759_v51 = vld [vmem:[#allocation5 + $0x180] ss:$16 sps:$4 sm:$0xff]   ;;  %v5761_v53 = vld [vmem:[#allocation5 + $0x1a4] ss:$16 sps:$4 sm:$0xff]  }
  0x80   :  { %1506 = vmatpush1.bf16.msra.mxu0 %v5711_v18  ;;  %1678 = vmatpush1.bf16.msra.mxu1 %v5712_v19  ;;  %v5760_v52 = vld [vmem:[#allocation5 + $0x188] ss:$16 sps:$4 sm:$0xff]   ;;  %v5763_v54 = vld [vmem:[#allocation5 + $0x1ac] ss:$16 sps:$4 sm:$0xff]   ;;  %v5765_v55 = vld [vmem:[#allocation5 + $0x1a0] ss:$16 sps:$4 sm:$0xff]  }
  0x81   :  { %1507 = vmatprep.subr.bf16.mxu0 %v5713_v20  ;;  %1679 = vmatprep.subr.bf16.mxu1 %v5715_v21  ;;  %v5766_v56 = vld [vmem:[#allocation5 + $0x1a8] ss:$16 sps:$4 sm:$0xff]   ;;  %v5767_v57 = vld [vmem:[#allocation5 + $0x1c4] ss:$16 sps:$4 sm:$0xff]   ;;  %v5769_v58 = vld [vmem:[#allocation5 + $0x1cc] ss:$16 sps:$4 sm:$0xff]  }
  0x82   :  { %1529 = vmatprep.mubr.bf16.mxu0 %v5781_v48  ;;  %1701 = vmatprep.mubr.bf16.mxu1 %v5781_v48  ;;  %v5771_v59 = vld [vmem:[#allocation5 + $0x1c0] ss:$16 sps:$4 sm:$0xff]   ;;  %v5772_v60 = vld [vmem:[#allocation5 + $0x1c8] ss:$16 sps:$4 sm:$0xff]   ;;  %v5773_v61 = vld [vmem:[#allocation5 + $0x1e4] ss:$16 sps:$4 sm:$0xff]  }
  0x83   :  { %v5775_v62 = vld [vmem:[#allocation5 + $0x1ec] ss:$16 sps:$4 sm:$0xff]   ;;  %v5777_v63 = vld [vmem:[#allocation5 + $0x1e0] ss:$16 sps:$4 sm:$0xff]   ;;  %v5778_v0 = vld [vmem:[#allocation5 + $0x1e8] ss:$16 sps:$4 sm:$0xff]  }
  0x84   :  { %1508 = vmatpush1.bf16.msra.mxu0 %v5717_v22  ;;  %1680 = vmatpush1.bf16.msra.mxu1 %v5718_v23  ;;  %v5784_v1 = vld [vmem:[#allocation5 + $0x204] ss:$16 sps:$4 sm:$0xff]   ;;  %v5787_v2 = vld [vmem:[#allocation5 + $0x20c] ss:$16 sps:$4 sm:$0xff]   ;;  %v5782_v4 = vld [vmem:[#allocation5 + $0x200] ss:$16 sps:$4 sm:$0xff]  }
  0x85   :  { %1509 = vmatprep.subr.bf16.mxu0 %v5719_v24  ;;  %1681 = vmatprep.subr.bf16.mxu1 %v5721_v25  ;;  %v5779_v3 = vld [vmem:[#allocation2] ss:$28 sps:$4 sm:$0xff]   ;;  %v5793_v7 = vld [vmem:[#allocation5 + $0x22c] ss:$16 sps:$4 sm:$0xff]   ;;  %v5788_v8 = vld [vmem:[#allocation5 + $0x220] ss:$16 sps:$4 sm:$0xff]  }
  0x86   :  { %v5785_v5 = vld [vmem:[#allocation5 + $0x208] ss:$16 sps:$4 sm:$0xff]   ;;  %v5790_v6 = vld [vmem:[#allocation5 + $0x224] ss:$16 sps:$4 sm:$0xff]   ;;  %v5799_v11 = vld [vmem:[#allocation5 + $0x24c] ss:$16 sps:$4 sm:$0xff]  }
  0x87   :  { %v5791_v9 = vld [vmem:[#allocation5 + $0x228] ss:$16 sps:$4 sm:$0xff]   ;;  %v5796_v10 = vld [vmem:[#allocation5 + $0x244] ss:$16 sps:$4 sm:$0xff]   ;;  %v5794_v12 = vld [vmem:[#allocation5 + $0x240] ss:$16 sps:$4 sm:$0xff]  }
  0x88   :  { %1510 = vmatpush1.bf16.msra.mxu0 %v5723_v26  ;;  %1682 = vmatpush1.bf16.msra.mxu1 %v5724_v27  ;;  %v5797_v13 = vld [vmem:[#allocation5 + $0x248] ss:$16 sps:$4 sm:$0xff]   ;;  %v5802_v14 = vld [vmem:[#allocation5 + $0x264] ss:$16 sps:$4 sm:$0xff]   ;;  %v5805_v15 = vld [vmem:[#allocation5 + $0x26c] ss:$16 sps:$4 sm:$0xff]  }
  0x89   :  { %1511 = vmatprep.subr.bf16.mxu0 %v5725_v28  ;;  %1683 = vmatprep.subr.bf16.mxu1 %v5727_v29  ;;  %v5800_v16 = vld [vmem:[#allocation5 + $0x260] ss:$16 sps:$4 sm:$0xff]   ;;  %v5803_v17 = vld [vmem:[#allocation5 + $0x268] ss:$16 sps:$4 sm:$0xff]   ;;  %v5808_v18 = vld [vmem:[#allocation5 + $0x284] ss:$16 sps:$4 sm:$0xff]  }
  0x8a   :  { %v5811_v19 = vld [vmem:[#allocation5 + $0x28c] ss:$16 sps:$4 sm:$0xff]   ;;  %v5806_v20 = vld [vmem:[#allocation5 + $0x280] ss:$16 sps:$4 sm:$0xff]   ;;  %v5809_v21 = vld [vmem:[#allocation5 + $0x288] ss:$16 sps:$4 sm:$0xff]  }
  0x8b   :  { %v5814_v22 = vld [vmem:[#allocation5 + $0x2a4] ss:$16 sps:$4 sm:$0xff]   ;;  %v5817_v23 = vld [vmem:[#allocation5 + $0x2ac] ss:$16 sps:$4 sm:$0xff]   ;;  %v5812_v24 = vld [vmem:[#allocation5 + $0x2a0] ss:$16 sps:$4 sm:$0xff]  }
  0x8c   :  { %1512 = vmatpush1.bf16.msra.mxu0 %v5729_v30  ;;  %1684 = vmatpush1.bf16.msra.mxu1 %v5730_v31  ;;  %v5815_v25 = vld [vmem:[#allocation5 + $0x2a8] ss:$16 sps:$4 sm:$0xff]   ;;  %v5820_v26 = vld [vmem:[#allocation5 + $0x2c4] ss:$16 sps:$4 sm:$0xff]   ;;  %v5823_v27 = vld [vmem:[#allocation5 + $0x2cc] ss:$16 sps:$4 sm:$0xff]  }
  0x8d   :  { %1513 = vmatprep.subr.bf16.mxu0 %v5731_v32  ;;  %1685 = vmatprep.subr.bf16.mxu1 %v5733_v33  ;;  %v5818_v28 = vld [vmem:[#allocation5 + $0x2c0] ss:$16 sps:$4 sm:$0xff]   ;;  %v5821_v29 = vld [vmem:[#allocation5 + $0x2c8] ss:$16 sps:$4 sm:$0xff]   ;;  %v5826_v31 = vld [vmem:[#allocation5 + $0x2e4] ss:$16 sps:$4 sm:$0xff]  }
  0x8e   :  { %v5880_v30 = vld [vmem:[#allocation2 + $0xc] ss:$28 sps:$4 sm:$0xff]   ;;  %v5829_v32 = vld [vmem:[#allocation5 + $0x2ec] ss:$16 sps:$4 sm:$0xff]   ;;  %s6822_s5 = smov [#allocation13]  }
  0x8f   :  { %v5824_v33 = vld [vmem:[#allocation5 + $0x2e0] ss:$16 sps:$4 sm:$0xff]   ;;  %v5853_v48 = vld [vmem:[#allocation5 + $0x36c] ss:$16 sps:$4 sm:$0xff]   ;;  %s4939_s8 = sshll.u32 %s6822_s5, 4  ;;  %s4940_s8 = int_to_ptr.vmem [resolvable:$true] %s4939_s8 }
  0x90   :  { %1514 = vmatpush1.bf16.msra.mxu0 %v5735_v34  ;;  %1686 = vmatpush1.bf16.msra.mxu1 %v5736_v35  ;;  %v5827_v34 = vld [vmem:[#allocation5 + $0x2e8] ss:$16 sps:$4 sm:$0xff]   ;;  %v5832_v35 = vld [vmem:[#allocation5 + $0x304] ss:$16 sps:$4 sm:$0xff]   ;;  %s6777_s19 = scalar_lea.vmem %s4940_s8, 896  ;;  %p6782_p7 = scmp.lt.s32.totalorder %s4940_s8, %s4940_s8 }
  0x91   :  { %1515 = vmatprep.subr.bf16.mxu0 %v5737_v36  ;;  %1687 = vmatprep.subr.bf16.mxu1 %v5739_v37  ;;  %v5835_v36 = vld [vmem:[#allocation5 + $0x30c] ss:$16 sps:$4 sm:$0xff]   ;;  %v5830_v37 = vld [vmem:[#allocation5 + $0x300] ss:$16 sps:$4 sm:$0xff]   ;;  %p6778_p6 = scmp.ne.s32.totalorder %s4940_s8, %s6777_s19  ;;  %p6783_p8 = scmp.lt.s32.totalorder %s6777_s19, %s6777_s19 }
  0x93   :  { %p6784_p9 = por %p6783_p8, %p6782_p7 }
  0x94   :  { %1516 = vmatpush1.bf16.msra.mxu0 %v5741_v38  ;;  %1688 = vmatpush1.bf16.msra.mxu1 %v5742_v39  ;;  %v5833_v38 = vld [vmem:[#allocation5 + $0x308] ss:$16 sps:$4 sm:$0xff]   ;;  %v5838_v39 = vld [vmem:[#allocation5 + $0x324] ss:$16 sps:$4 sm:$0xff]  }
  0x95   :  { %1517 = vmatprep.subr.bf16.mxu0 %v5743_v40  ;;  %1689 = vmatprep.subr.bf16.mxu1 %v5745_v41  ;;  %v5841_v40 = vld [vmem:[#allocation5 + $0x32c] ss:$16 sps:$4 sm:$0xff]   ;;  %v5836_v41 = vld [vmem:[#allocation5 + $0x320] ss:$16 sps:$4 sm:$0xff]   ;;  %p6785_p10 = pnand %p6784_p9, %p6778_p6 }
  0x98   :  { %1518 = vmatpush1.bf16.msra.mxu0 %v5747_v42  ;;  %1690 = vmatpush1.bf16.msra.mxu1 %v5748_v43  ;;  %v5839_v42 = vld [vmem:[#allocation5 + $0x328] ss:$16 sps:$4 sm:$0xff]   ;;  %v5844_v43 = vld [vmem:[#allocation5 + $0x344] ss:$16 sps:$4 sm:$0xff]  }
  0x99   :  { %1519 = vmatprep.subr.bf16.mxu0 %v5749_v44  ;;  %1691 = vmatprep.subr.bf16.mxu1 %v5751_v45  ;;  %v5847_v44 = vld [vmem:[#allocation5 + $0x34c] ss:$16 sps:$4 sm:$0xff]   ;;  %v5842_v45 = vld [vmem:[#allocation5 + $0x340] ss:$16 sps:$4 sm:$0xff]  }
  0x9c   :  { %1520 = vmatpush1.bf16.msra.mxu0 %v5753_v46  ;;  %1692 = vmatpush1.bf16.msra.mxu1 %v5754_v47  ;;  %v5845_v46 = vld [vmem:[#allocation5 + $0x348] ss:$16 sps:$4 sm:$0xff]   ;;  %v5850_v47 = vld [vmem:[#allocation5 + $0x364] ss:$16 sps:$4 sm:$0xff]  }
  0x9d   :  { %1521 = vmatprep.subr.bf16.mxu0 %v5755_v49  ;;  %1693 = vmatprep.subr.bf16.mxu1 %v5757_v50  ;;  %v5848_v49 = vld [vmem:[#allocation5 + $0x360] ss:$16 sps:$4 sm:$0xff]   ;;  %v5851_v50 = vld [vmem:[#allocation5 + $0x368] ss:$16 sps:$4 sm:$0xff]  }
  0xa0   :  { %1522 = vmatpush1.bf16.msra.mxu0 %v5759_v51  ;;  %1694 = vmatpush1.bf16.msra.mxu1 %v5760_v52  ;;  %v5856_v51 = vld [vmem:[#allocation5 + $0x384] ss:$16 sps:$4 sm:$0xff]   ;;  %v5859_v52 = vld [vmem:[#allocation5 + $0x38c] ss:$16 sps:$4 sm:$0xff]  }
  0xa1   :  { %1523 = vmatprep.subr.bf16.mxu0 %v5761_v53  ;;  %1695 = vmatprep.subr.bf16.mxu1 %v5763_v54  ;;  %v5854_v53 = vld [vmem:[#allocation5 + $0x380] ss:$16 sps:$4 sm:$0xff]   ;;  %v5857_v54 = vld [vmem:[#allocation5 + $0x388] ss:$16 sps:$4 sm:$0xff]  }
  0xa4   :  { %1524 = vmatpush1.bf16.msra.mxu0 %v5765_v55  ;;  %1696 = vmatpush1.bf16.msra.mxu1 %v5766_v56  ;;  %v5862_v55 = vld [vmem:[#allocation5 + $0x3a4] ss:$16 sps:$4 sm:$0xff]   ;;  %v5865_v56 = vld [vmem:[#allocation5 + $0x3ac] ss:$16 sps:$4 sm:$0xff]  }
  0xa5   :  { %1525 = vmatprep.subr.bf16.mxu0 %v5767_v57  ;;  %1697 = vmatprep.subr.bf16.mxu1 %v5769_v58  ;;  %v5860_v57 = vld [vmem:[#allocation5 + $0x3a0] ss:$16 sps:$4 sm:$0xff]   ;;  %v5863_v58 = vld [vmem:[#allocation5 + $0x3a8] ss:$16 sps:$4 sm:$0xff]  }
  0xa8   :  { %1526 = vmatpush1.bf16.msra.mxu0 %v5771_v59  ;;  %1698 = vmatpush1.bf16.msra.mxu1 %v5772_v60  ;;  %v5868_v59 = vld [vmem:[#allocation5 + $0x3c4] ss:$16 sps:$4 sm:$0xff]   ;;  %v5871_v60 = vld [vmem:[#allocation5 + $0x3cc] ss:$16 sps:$4 sm:$0xff]  }
  0xa9   :  { %1527 = vmatprep.subr.bf16.mxu0 %v5773_v61  ;;  %1699 = vmatprep.subr.bf16.mxu1 %v5775_v62  ;;  %v5866_v61 = vld [vmem:[#allocation5 + $0x3c0] ss:$16 sps:$4 sm:$0xff]   ;;  %v5869_v62 = vld [vmem:[#allocation5 + $0x3c8] ss:$16 sps:$4 sm:$0xff]  }
  0xac   :  { %1528 = vmatpush1.bf16.msra.mxu0 %v5777_v63  ;;  %1700 = vmatpush1.bf16.msra.mxu1 %v5778_v0  ;;  %v5874_v63 = vld [vmem:[#allocation5 + $0x3e4] ss:$16 sps:$4 sm:$0xff]   ;;  %v5877_v0 = vld [vmem:[#allocation5 + $0x3ec] ss:$16 sps:$4 sm:$0xff]  }
  0xad   :  { %1540 = vmatprep.subr.bf16.mxu0 %v5784_v1  ;;  %1712 = vmatprep.subr.bf16.mxu1 %v5787_v2  ;;  %v5872_v1 = vld [vmem:[#allocation5 + $0x3e0] ss:$16 sps:$4 sm:$0xff]   ;;  %v5875_v2 = vld [vmem:[#allocation5 + $0x3e8] ss:$16 sps:$4 sm:$0xff]  }
  0xaf   :  { %1530 = vmatmul.mubr.bf16.vlgmr.msra.gmra.mrb[0].mxu0 %v5779_v3  ;;  %1702 = vmatmul.mubr.bf16.vlgmr.msra.gmra.mrb[0].mxu1 %v5779_v3  ;;  %v5883_v3 = vld [vmem:[#allocation5 + $0x404] ss:$16 sps:$4 sm:$0xff]  }
  0xb0   :  { %1541 = vmatpush1.bf16.msra.mxu0 %v5782_v4  ;;  %1713 = vmatpush1.bf16.msra.mxu1 %v5785_v5  ;;  %v5886_v4 = vld [vmem:[#allocation5 + $0x40c] ss:$16 sps:$4 sm:$0xff]  }
  0xb1   :  { %1542 = vmatprep.subr.bf16.mxu0 %v5790_v6  ;;  %1714 = vmatprep.subr.bf16.mxu1 %v5793_v7  ;;  %v5878_v5 = vld [vmem:[#allocation2 + $0x8] ss:$28 sps:$4 sm:$0xff]   ;;  %v5884_v7 = vld [vmem:[#allocation5 + $0x408] ss:$16 sps:$4 sm:$0xff]  }
  0xb2   :  { %1572 = vmatprep.mubr.bf16.mxu0 %v5880_v30  ;;  %1744 = vmatprep.mubr.bf16.mxu1 %v5880_v30  ;;  %v5881_v6 = vld [vmem:[#allocation5 + $0x400] ss:$16 sps:$4 sm:$0xff]   ;;  %v5922_v30 = vld [vmem:[#allocation5 + $0x4cc] ss:$16 sps:$4 sm:$0xff]  }
  0xb4   :  { %1543 = vmatpush1.bf16.msra.mxu0 %v5788_v8  ;;  %1715 = vmatpush1.bf16.msra.mxu1 %v5791_v9  ;;  %v5889_v8 = vld [vmem:[#allocation5 + $0x424] ss:$16 sps:$4 sm:$0xff]   ;;  %v5892_v9 = vld [vmem:[#allocation5 + $0x42c] ss:$16 sps:$4 sm:$0xff]  }
  0xb5   :  { %1544 = vmatprep.subr.bf16.mxu0 %v5796_v10  ;;  %1716 = vmatprep.subr.bf16.mxu1 %v5799_v11  ;;  %v5887_v10 = vld [vmem:[#allocation5 + $0x420] ss:$16 sps:$4 sm:$0xff]   ;;  %v5890_v11 = vld [vmem:[#allocation5 + $0x428] ss:$16 sps:$4 sm:$0xff]  }
  0xb8   :  { %1545 = vmatpush1.bf16.msra.mxu0 %v5794_v12  ;;  %1717 = vmatpush1.bf16.msra.mxu1 %v5797_v13  ;;  %v5979_v12 = vld [vmem:[#allocation2 + $0x14] ss:$28 sps:$4 sm:$0xff]   ;;  %v5895_v13 = vld [vmem:[#allocation5 + $0x444] ss:$16 sps:$4 sm:$0xff]  }
  0xb9   :  { %1546 = vmatprep.subr.bf16.mxu0 %v5802_v14  ;;  %1718 = vmatprep.subr.bf16.mxu1 %v5805_v15  ;;  %v5898_v14 = vld [vmem:[#allocation5 + $0x44c] ss:$16 sps:$4 sm:$0xff]   ;;  %v5893_v15 = vld [vmem:[#allocation5 + $0x440] ss:$16 sps:$4 sm:$0xff]  }
  0xbc   :  { %1547 = vmatpush1.bf16.msra.mxu0 %v5800_v16  ;;  %1719 = vmatpush1.bf16.msra.mxu1 %v5803_v17  ;;  %v5896_v16 = vld [vmem:[#allocation5 + $0x448] ss:$16 sps:$4 sm:$0xff]   ;;  %v5901_v17 = vld [vmem:[#allocation5 + $0x464] ss:$16 sps:$4 sm:$0xff]  }
  0xbd   :  { %1548 = vmatprep.subr.bf16.mxu0 %v5808_v18  ;;  %1720 = vmatprep.subr.bf16.mxu1 %v5811_v19  ;;  %v5904_v18 = vld [vmem:[#allocation5 + $0x46c] ss:$16 sps:$4 sm:$0xff]   ;;  %v5899_v19 = vld [vmem:[#allocation5 + $0x460] ss:$16 sps:$4 sm:$0xff]  }
  0xc0   :  { %1549 = vmatpush1.bf16.msra.mxu0 %v5806_v20  ;;  %1721 = vmatpush1.bf16.msra.mxu1 %v5809_v21  ;;  %v5902_v20 = vld [vmem:[#allocation5 + $0x468] ss:$16 sps:$4 sm:$0xff]   ;;  %v5907_v21 = vld [vmem:[#allocation5 + $0x484] ss:$16 sps:$4 sm:$0xff]  }
  0xc1   :  { %1550 = vmatprep.subr.bf16.mxu0 %v5814_v22  ;;  %1722 = vmatprep.subr.bf16.mxu1 %v5817_v23  ;;  %v5910_v22 = vld [vmem:[#allocation5 + $0x48c] ss:$16 sps:$4 sm:$0xff]   ;;  %v5905_v23 = vld [vmem:[#allocation5 + $0x480] ss:$16 sps:$4 sm:$0xff]  }
  0xc4   :  { %1551 = vmatpush1.bf16.msra.mxu0 %v5812_v24  ;;  %1723 = vmatpush1.bf16.msra.mxu1 %v5815_v25  ;;  %v5908_v24 = vld [vmem:[#allocation5 + $0x488] ss:$16 sps:$4 sm:$0xff]   ;;  %v5913_v25 = vld [vmem:[#allocation5 + $0x4a4] ss:$16 sps:$4 sm:$0xff]  }
  0xc5   :  { %1552 = vmatprep.subr.bf16.mxu0 %v5820_v26  ;;  %1724 = vmatprep.subr.bf16.mxu1 %v5823_v27  ;;  %v5916_v26 = vld [vmem:[#allocation5 + $0x4ac] ss:$16 sps:$4 sm:$0xff]   ;;  %v5911_v27 = vld [vmem:[#allocation5 + $0x4a0] ss:$16 sps:$4 sm:$0xff]  }
  0xc8   :  { %1553 = vmatpush1.bf16.msra.mxu0 %v5818_v28  ;;  %1725 = vmatpush1.bf16.msra.mxu1 %v5821_v29  ;;  %v5914_v28 = vld [vmem:[#allocation5 + $0x4a8] ss:$16 sps:$4 sm:$0xff]   ;;  %v5919_v29 = vld [vmem:[#allocation5 + $0x4c4] ss:$16 sps:$4 sm:$0xff]  }
  0xc9   :  { %1554 = vmatprep.subr.bf16.mxu0 %v5826_v31  ;;  %1726 = vmatprep.subr.bf16.mxu1 %v5829_v32  ;;  %v5917_v31 = vld [vmem:[#allocation5 + $0x4c0] ss:$16 sps:$4 sm:$0xff]   ;;  %v5920_v32 = vld [vmem:[#allocation5 + $0x4c8] ss:$16 sps:$4 sm:$0xff]  }
  0xcc   :  { %1555 = vmatpush1.bf16.msra.mxu0 %v5824_v33  ;;  %1727 = vmatpush1.bf16.msra.mxu1 %v5827_v34  ;;  %v5925_v33 = vld [vmem:[#allocation5 + $0x4e4] ss:$16 sps:$4 sm:$0xff]   ;;  %v5928_v34 = vld [vmem:[#allocation5 + $0x4ec] ss:$16 sps:$4 sm:$0xff]  }
  0xcd   :  { %1556 = vmatprep.subr.bf16.mxu0 %v5832_v35  ;;  %1728 = vmatprep.subr.bf16.mxu1 %v5835_v36  ;;  %v5923_v35 = vld [vmem:[#allocation5 + $0x4e0] ss:$16 sps:$4 sm:$0xff]   ;;  %v5926_v36 = vld [vmem:[#allocation5 + $0x4e8] ss:$16 sps:$4 sm:$0xff]  }
  0xd0   :  { %1557 = vmatpush1.bf16.msra.mxu0 %v5830_v37  ;;  %1729 = vmatpush1.bf16.msra.mxu1 %v5833_v38  ;;  %v5931_v37 = vld [vmem:[#allocation5 + $0x504] ss:$16 sps:$4 sm:$0xff]   ;;  %v5934_v38 = vld [vmem:[#allocation5 + $0x50c] ss:$16 sps:$4 sm:$0xff]  }
  0xd1   :  { %1558 = vmatprep.subr.bf16.mxu0 %v5838_v39  ;;  %1730 = vmatprep.subr.bf16.mxu1 %v5841_v40  ;;  %v5929_v39 = vld [vmem:[#allocation5 + $0x500] ss:$16 sps:$4 sm:$0xff]   ;;  %v5932_v40 = vld [vmem:[#allocation5 + $0x508] ss:$16 sps:$4 sm:$0xff]  }
  0xd4   :  { %1559 = vmatpush1.bf16.msra.mxu0 %v5836_v41  ;;  %1731 = vmatpush1.bf16.msra.mxu1 %v5839_v42  ;;  %v5937_v41 = vld [vmem:[#allocation5 + $0x524] ss:$16 sps:$4 sm:$0xff]   ;;  %v5940_v42 = vld [vmem:[#allocation5 + $0x52c] ss:$16 sps:$4 sm:$0xff]  }
  0xd5   :  { %1560 = vmatprep.subr.bf16.mxu0 %v5844_v43  ;;  %1732 = vmatprep.subr.bf16.mxu1 %v5847_v44  ;;  %v5935_v43 = vld [vmem:[#allocation5 + $0x520] ss:$16 sps:$4 sm:$0xff]   ;;  %v5938_v44 = vld [vmem:[#allocation5 + $0x528] ss:$16 sps:$4 sm:$0xff]  }
  0xd8   :  { %1561 = vmatpush1.bf16.msra.mxu0 %v5842_v45  ;;  %1733 = vmatpush1.bf16.msra.mxu1 %v5845_v46  ;;  %v5943_v45 = vld [vmem:[#allocation5 + $0x544] ss:$16 sps:$4 sm:$0xff]   ;;  %v5946_v46 = vld [vmem:[#allocation5 + $0x54c] ss:$16 sps:$4 sm:$0xff]  }
  0xd9   :  { %1562 = vmatprep.subr.bf16.mxu0 %v5850_v47  ;;  %1734 = vmatprep.subr.bf16.mxu1 %v5853_v48  ;;  %v5941_v47 = vld [vmem:[#allocation5 + $0x540] ss:$16 sps:$4 sm:$0xff]   ;;  %v5944_v48 = vld [vmem:[#allocation5 + $0x548] ss:$16 sps:$4 sm:$0xff]  }
  0xdc   :  { %1563 = vmatpush1.bf16.msra.mxu0 %v5848_v49  ;;  %1735 = vmatpush1.bf16.msra.mxu1 %v5851_v50  ;;  %v5949_v49 = vld [vmem:[#allocation5 + $0x564] ss:$16 sps:$4 sm:$0xff]   ;;  %v5952_v50 = vld [vmem:[#allocation5 + $0x56c] ss:$16 sps:$4 sm:$0xff]  }
  0xdd   :  { %1564 = vmatprep.subr.bf16.mxu0 %v5856_v51  ;;  %1736 = vmatprep.subr.bf16.mxu1 %v5859_v52  ;;  %v5947_v51 = vld [vmem:[#allocation5 + $0x560] ss:$16 sps:$4 sm:$0xff]   ;;  %v5950_v52 = vld [vmem:[#allocation5 + $0x568] ss:$16 sps:$4 sm:$0xff]  }
  0xe0   :  { %1565 = vmatpush1.bf16.msra.mxu0 %v5854_v53  ;;  %1737 = vmatpush1.bf16.msra.mxu1 %v5857_v54  ;;  %v5955_v53 = vld [vmem:[#allocation5 + $0x584] ss:$16 sps:$4 sm:$0xff]   ;;  %v5958_v54 = vld [vmem:[#allocation5 + $0x58c] ss:$16 sps:$4 sm:$0xff]  }
  0xe1   :  { %1566 = vmatprep.subr.bf16.mxu0 %v5862_v55  ;;  %1738 = vmatprep.subr.bf16.mxu1 %v5865_v56  ;;  %v5953_v55 = vld [vmem:[#allocation5 + $0x580] ss:$16 sps:$4 sm:$0xff]   ;;  %v5956_v56 = vld [vmem:[#allocation5 + $0x588] ss:$16 sps:$4 sm:$0xff]  }
  0xe4   :  { %1567 = vmatpush1.bf16.msra.mxu0 %v5860_v57  ;;  %1739 = vmatpush1.bf16.msra.mxu1 %v5863_v58  ;;  %v5961_v57 = vld [vmem:[#allocation5 + $0x5a4] ss:$16 sps:$4 sm:$0xff]   ;;  %v5964_v58 = vld [vmem:[#allocation5 + $0x5ac] ss:$16 sps:$4 sm:$0xff]  }
  0xe5   :  { %1568 = vmatprep.subr.bf16.mxu0 %v5868_v59  ;;  %1740 = vmatprep.subr.bf16.mxu1 %v5871_v60  ;;  %v5959_v59 = vld [vmem:[#allocation5 + $0x5a0] ss:$16 sps:$4 sm:$0xff]   ;;  %v5962_v60 = vld [vmem:[#allocation5 + $0x5a8] ss:$16 sps:$4 sm:$0xff]  }
  0xe8   :  { %1569 = vmatpush1.bf16.msra.mxu0 %v5866_v61  ;;  %1741 = vmatpush1.bf16.msra.mxu1 %v5869_v62  ;;  %v5967_v61 = vld [vmem:[#allocation5 + $0x5c4] ss:$16 sps:$4 sm:$0xff]   ;;  %v5970_v62 = vld [vmem:[#allocation5 + $0x5cc] ss:$16 sps:$4 sm:$0xff]  }
  0xe9   :  { %1570 = vmatprep.subr.bf16.mxu0 %v5874_v63  ;;  %1742 = vmatprep.subr.bf16.mxu1 %v5877_v0  ;;  %v5965_v63 = vld [vmem:[#allocation5 + $0x5c0] ss:$16 sps:$4 sm:$0xff]   ;;  %v5968_v0 = vld [vmem:[#allocation5 + $0x5c8] ss:$16 sps:$4 sm:$0xff]  }
  0xec   :  { %1571 = vmatpush1.bf16.msra.mxu0 %v5872_v1  ;;  %1743 = vmatpush1.bf16.msra.mxu1 %v5875_v2  ;;  %v5973_v1 = vld [vmem:[#allocation5 + $0x5e4] ss:$16 sps:$4 sm:$0xff]   ;;  %v5976_v2 = vld [vmem:[#allocation5 + $0x5ec] ss:$16 sps:$4 sm:$0xff]  }
  0xed   :  { %1583 = vmatprep.subr.bf16.mxu0 %v5883_v3  ;;  %1755 = vmatprep.subr.bf16.mxu1 %v5886_v4  ;;  %v5971_v3 = vld [vmem:[#allocation5 + $0x5e0] ss:$16 sps:$4 sm:$0xff]   ;;  %v5974_v4 = vld [vmem:[#allocation5 + $0x5e8] ss:$16 sps:$4 sm:$0xff]  }
  0xef   :  { %1573 = vmatmul.mubr.bf16.vlgmr.msra.gmra.mrb[0].mxu0 %v5878_v5  ;;  %1745 = vmatmul.mubr.bf16.vlgmr.msra.gmra.mrb[0].mxu1 %v5878_v5  ;;  %v5982_v5 = vld [vmem:[#allocation5 + $0x604] ss:$16 sps:$4 sm:$0xff]  }
  0xf0   :  { %1584 = vmatpush1.bf16.msra.mxu0 %v5881_v6  ;;  %1756 = vmatpush1.bf16.msra.mxu1 %v5884_v7  ;;  %v5985_v6 = vld [vmem:[#allocation5 + $0x60c] ss:$16 sps:$4 sm:$0xff]   ;;  %v5977_v7 = vld [vmem:[#allocation2 + $0x10] ss:$28 sps:$4 sm:$0xff]  }
  0xf1   :  { %1585 = vmatprep.subr.bf16.mxu0 %v5889_v8  ;;  %1757 = vmatprep.subr.bf16.mxu1 %v5892_v9  ;;  %v5980_v8 = vld [vmem:[#allocation5 + $0x600] ss:$16 sps:$4 sm:$0xff]   ;;  %v5983_v9 = vld [vmem:[#allocation5 + $0x608] ss:$16 sps:$4 sm:$0xff]  }
  0xf2   :  { %1615 = vmatprep.mubr.bf16.mxu0 %v5979_v12  ;;  %1787 = vmatprep.mubr.bf16.mxu1 %v5979_v12  ;;  %v5986_v12 = vld [vmem:[#allocation5 + $0x620] ss:$16 sps:$4 sm:$0xff]  }
  0xf4   :  { %1586 = vmatpush1.bf16.msra.mxu0 %v5887_v10  ;;  %1758 = vmatpush1.bf16.msra.mxu1 %v5890_v11  ;;  %v5988_v10 = vld [vmem:[#allocation5 + $0x624] ss:$16 sps:$4 sm:$0xff]   ;;  %v5991_v11 = vld [vmem:[#allocation5 + $0x62c] ss:$16 sps:$4 sm:$0xff]  }
  0xf5   :  { %1587 = vmatprep.subr.bf16.mxu0 %v5895_v13  ;;  %1759 = vmatprep.subr.bf16.mxu1 %v5898_v14  ;;  %v5989_v13 = vld [vmem:[#allocation5 + $0x628] ss:$16 sps:$4 sm:$0xff]   ;;  %v5994_v14 = vld [vmem:[#allocation5 + $0x644] ss:$16 sps:$4 sm:$0xff]  }
  0xf8   :  { %1588 = vmatpush1.bf16.msra.mxu0 %v5893_v15  ;;  %1760 = vmatpush1.bf16.msra.mxu1 %v5896_v16  ;;  %v5997_v15 = vld [vmem:[#allocation5 + $0x64c] ss:$16 sps:$4 sm:$0xff]   ;;  %v5992_v16 = vld [vmem:[#allocation5 + $0x640] ss:$16 sps:$4 sm:$0xff]  }
  0xf9   :  { %1589 = vmatprep.subr.bf16.mxu0 %v5901_v17  ;;  %1761 = vmatprep.subr.bf16.mxu1 %v5904_v18  ;;  %v5995_v17 = vld [vmem:[#allocation5 + $0x648] ss:$16 sps:$4 sm:$0xff]   ;;  %v6821_v18 = vmov 0  }
  0xfc   :  { %1590 = vmatpush1.bf16.msra.mxu0 %v5899_v19  ;;  %1762 = vmatpush1.bf16.msra.mxu1 %v5902_v20  ;;  %v6000_v19 = vld [vmem:[#allocation5 + $0x664] ss:$16 sps:$4 sm:$0xff]   ;;  %v6003_v20 = vld [vmem:[#allocation5 + $0x66c] ss:$16 sps:$4 sm:$0xff]  }
  0xfd   :  { %1591 = vmatprep.subr.bf16.mxu0 %v5907_v21  ;;  %1763 = vmatprep.subr.bf16.mxu1 %v5910_v22  ;;  %v5998_v21 = vld [vmem:[#allocation5 + $0x660] ss:$16 sps:$4 sm:$0xff]   ;;  %v6001_v22 = vld [vmem:[#allocation5 + $0x668] ss:$16 sps:$4 sm:$0xff]  }
 0x100   :  { %1592 = vmatpush1.bf16.msra.mxu0 %v5905_v23  ;;  %1764 = vmatpush1.bf16.msra.mxu1 %v5908_v24  ;;  %v6006_v23 = vld [vmem:[#allocation5 + $0x684] ss:$16 sps:$4 sm:$0xff]   ;;  %v6009_v24 = vld [vmem:[#allocation5 + $0x68c] ss:$16 sps:$4 sm:$0xff]  }
 0x101   :  { %1593 = vmatprep.subr.bf16.mxu0 %v5913_v25  ;;  %1765 = vmatprep.subr.bf16.mxu1 %v5916_v26  ;;  %v6004_v25 = vld [vmem:[#allocation5 + $0x680] ss:$16 sps:$4 sm:$0xff]   ;;  %v6007_v26 = vld [vmem:[#allocation5 + $0x688] ss:$16 sps:$4 sm:$0xff]  }
 0x104   :  { %1594 = vmatpush1.bf16.msra.mxu0 %v5911_v27  ;;  %1766 = vmatpush1.bf16.msra.mxu1 %v5914_v28  ;;  %v6012_v27 = vld [vmem:[#allocation5 + $0x6a4] ss:$16 sps:$4 sm:$0xff]   ;;  %v6015_v28 = vld [vmem:[#allocation5 + $0x6ac] ss:$16 sps:$4 sm:$0xff]  }
 0x105   :  { %1595 = vmatprep.subr.bf16.mxu0 %v5919_v29  ;;  %1767 = vmatprep.subr.bf16.mxu1 %v5922_v30  ;;  %v6010_v29 = vld [vmem:[#allocation5 + $0x6a0] ss:$16 sps:$4 sm:$0xff]   ;;  %v6013_v30 = vld [vmem:[#allocation5 + $0x6a8] ss:$16 sps:$4 sm:$0xff]  }
 0x108   :  { %1596 = vmatpush1.bf16.msra.mxu0 %v5917_v31  ;;  %1768 = vmatpush1.bf16.msra.mxu1 %v5920_v32  ;;  %v6018_v31 = vld [vmem:[#allocation5 + $0x6c4] ss:$16 sps:$4 sm:$0xff]   ;;  %v6021_v32 = vld [vmem:[#allocation5 + $0x6cc] ss:$16 sps:$4 sm:$0xff]  }
 0x109   :  { %1597 = vmatprep.subr.bf16.mxu0 %v5925_v33  ;;  %1769 = vmatprep.subr.bf16.mxu1 %v5928_v34  ;;  %v6016_v33 = vld [vmem:[#allocation5 + $0x6c0] ss:$16 sps:$4 sm:$0xff]   ;;  %v6019_v34 = vld [vmem:[#allocation5 + $0x6c8] ss:$16 sps:$4 sm:$0xff]  }
 0x10c   :  { %1598 = vmatpush1.bf16.msra.mxu0 %v5923_v35  ;;  %1770 = vmatpush1.bf16.msra.mxu1 %v5926_v36  ;;  %v6024_v35 = vld [vmem:[#allocation5 + $0x6e4] ss:$16 sps:$4 sm:$0xff]   ;;  %v6027_v36 = vld [vmem:[#allocation5 + $0x6ec] ss:$16 sps:$4 sm:$0xff]  }
 0x10d   :  { %1599 = vmatprep.subr.bf16.mxu0 %v5931_v37  ;;  %1771 = vmatprep.subr.bf16.mxu1 %v5934_v38  ;;  %v6022_v37 = vld [vmem:[#allocation5 + $0x6e0] ss:$16 sps:$4 sm:$0xff]   ;;  %v6025_v38 = vld [vmem:[#allocation5 + $0x6e8] ss:$16 sps:$4 sm:$0xff]  }
 0x110   :  { %1600 = vmatpush1.bf16.msra.mxu0 %v5929_v39  ;;  %1772 = vmatpush1.bf16.msra.mxu1 %v5932_v40  ;;  %v6031_v39 = vld [vmem:[#allocation7 + $0x4] ss:$8 sps:$4 sm:$0xff]   ;;  %v6028_v40 = vld [vmem:[#allocation2 + $0x18] ss:$28 sps:$4 sm:$0xff]  }
 0x111   :  { %1601 = vmatprep.subr.bf16.mxu0 %v5937_v41  ;;  %1773 = vmatprep.subr.bf16.mxu1 %v5940_v42  ;;  %v6029_v41 = vld [vmem:[#allocation7] ss:$8 sps:$4 sm:$0xff]   ;;  %v6034_v42 = vld [vmem:[#allocation7 + $0x14] ss:$8 sps:$4 sm:$0xff]  }
 0x114   :  { %1602 = vmatpush1.bf16.msra.mxu0 %v5935_v43  ;;  %1774 = vmatpush1.bf16.msra.mxu1 %v5938_v44  ;;  %v6032_v43 = vld [vmem:[#allocation7 + $0x10] ss:$8 sps:$4 sm:$0xff]   ;;  %v6037_v44 = vld [vmem:[#allocation7 + $0x24] ss:$8 sps:$4 sm:$0xff]  }
 0x115   :  { %1603 = vmatprep.subr.bf16.mxu0 %v5943_v45  ;;  %1775 = vmatprep.subr.bf16.mxu1 %v5946_v46  ;;  %v6035_v45 = vld [vmem:[#allocation7 + $0x20] ss:$8 sps:$4 sm:$0xff]   ;;  %v6040_v46 = vld [vmem:[#allocation7 + $0x34] ss:$8 sps:$4 sm:$0xff]  }
 0x118   :  { %1604 = vmatpush1.bf16.msra.mxu0 %v5941_v47  ;;  %1776 = vmatpush1.bf16.msra.mxu1 %v5944_v48  ;;  %v6038_v47 = vld [vmem:[#allocation7 + $0x30] ss:$8 sps:$4 sm:$0xff]   ;;  %v6043_v48 = vld [vmem:[#allocation7 + $0x44] ss:$8 sps:$4 sm:$0xff]  }
 0x119   :  { %1605 = vmatprep.subr.bf16.mxu0 %v5949_v49  ;;  %1777 = vmatprep.subr.bf16.mxu1 %v5952_v50  ;;  %v6041_v49 = vld [vmem:[#allocation7 + $0x40] ss:$8 sps:$4 sm:$0xff]   ;;  %v6046_v50 = vld [vmem:[#allocation7 + $0x54] ss:$8 sps:$4 sm:$0xff]  }
 0x11c   :  { %1606 = vmatpush1.bf16.msra.mxu0 %v5947_v51  ;;  %1778 = vmatpush1.bf16.msra.mxu1 %v5950_v52  ;;  %v6044_v51 = vld [vmem:[#allocation7 + $0x50] ss:$8 sps:$4 sm:$0xff]   ;;  %v6049_v52 = vld [vmem:[#allocation7 + $0x64] ss:$8 sps:$4 sm:$0xff]  }
 0x11d   :  { %1607 = vmatprep.subr.bf16.mxu0 %v5955_v53  ;;  %1779 = vmatprep.subr.bf16.mxu1 %v5958_v54  ;;  %v6047_v53 = vld [vmem:[#allocation7 + $0x60] ss:$8 sps:$4 sm:$0xff]   ;;  %v6052_v54 = vld [vmem:[#allocation7 + $0x74] ss:$8 sps:$4 sm:$0xff]  }
 0x120   :  { %1608 = vmatpush1.bf16.msra.mxu0 %v5953_v55  ;;  %1780 = vmatpush1.bf16.msra.mxu1 %v5956_v56  ;;  %v6050_v55 = vld [vmem:[#allocation7 + $0x70] ss:$8 sps:$4 sm:$0xff]   ;;  %v6055_v56 = vld [vmem:[#allocation7 + $0x84] ss:$8 sps:$4 sm:$0xff]  }
 0x121   :  { %1609 = vmatprep.subr.bf16.mxu0 %v5961_v57  ;;  %1781 = vmatprep.subr.bf16.mxu1 %v5964_v58  ;;  %v6053_v57 = vld [vmem:[#allocation7 + $0x80] ss:$8 sps:$4 sm:$0xff]   ;;  %v6058_v58 = vld [vmem:[#allocation7 + $0x94] ss:$8 sps:$4 sm:$0xff]  }
 0x124   :  { %1610 = vmatpush1.bf16.msra.mxu0 %v5959_v59  ;;  %1782 = vmatpush1.bf16.msra.mxu1 %v5962_v60  ;;  %v6056_v59 = vld [vmem:[#allocation7 + $0x90] ss:$8 sps:$4 sm:$0xff]   ;;  %v6061_v60 = vld [vmem:[#allocation7 + $0xa4] ss:$8 sps:$4 sm:$0xff]  }
 0x125   :  { %1611 = vmatprep.subr.bf16.mxu0 %v5967_v61  ;;  %1783 = vmatprep.subr.bf16.mxu1 %v5970_v62  ;;  %v6059_v61 = vld [vmem:[#allocation7 + $0xa0] ss:$8 sps:$4 sm:$0xff]   ;;  %v6064_v62 = vld [vmem:[#allocation7 + $0xb4] ss:$8 sps:$4 sm:$0xff]  }
 0x128   :  { %1612 = vmatpush1.bf16.msra.mxu0 %v5965_v63  ;;  %1784 = vmatpush1.bf16.msra.mxu1 %v5968_v0  ;;  %v6062_v63 = vld [vmem:[#allocation7 + $0xb0] ss:$8 sps:$4 sm:$0xff]   ;;  %v6067_v0 = vld [vmem:[#allocation7 + $0xc4] ss:$8 sps:$4 sm:$0xff]  }
 0x129   :  { %1613 = vmatprep.subr.bf16.mxu0 %v5973_v1  ;;  %1785 = vmatprep.subr.bf16.mxu1 %v5976_v2  ;;  %v6065_v1 = vld [vmem:[#allocation7 + $0xc0] ss:$8 sps:$4 sm:$0xff]   ;;  %v6070_v2 = vld [vmem:[#allocation7 + $0xd4] ss:$8 sps:$4 sm:$0xff]  }
 0x12c   :  { %1614 = vmatpush1.bf16.msra.mxu0 %v5971_v3  ;;  %1786 = vmatpush1.bf16.msra.mxu1 %v5974_v4  ;;  %v6068_v3 = vld [vmem:[#allocation7 + $0xd0] ss:$8 sps:$4 sm:$0xff]   ;;  %v6073_v4 = vld [vmem:[#allocation7 + $0xe4] ss:$8 sps:$4 sm:$0xff]  }
 0x12d   :  { %1626 = vmatprep.subr.bf16.mxu0 %v5982_v5  ;;  %1798 = vmatprep.subr.bf16.mxu1 %v5985_v6  ;;  %v6071_v5 = vld [vmem:[#allocation7 + $0xe0] ss:$8 sps:$4 sm:$0xff]   ;;  %v6076_v6 = vld [vmem:[#allocation7 + $0xf4] ss:$8 sps:$4 sm:$0xff]  }
 0x12f   :  { %1616 = vmatmul.mubr.bf16.vlgmr.msra.gmra.mrb[0].mxu0 %v5977_v7  ;;  %1788 = vmatmul.mubr.bf16.vlgmr.msra.gmra.mrb[0].mxu1 %v5977_v7  ;;  %v6074_v7 = vld [vmem:[#allocation7 + $0xf0] ss:$8 sps:$4 sm:$0xff]  }
 0x130   :  { %1627 = vmatpush1.bf16.msra.mxu0 %v5980_v8  ;;  %1799 = vmatpush1.bf16.msra.mxu1 %v5983_v9  ;;  %v6079_v8 = vld [vmem:[#allocation7 + $0x104] ss:$8 sps:$4 sm:$0xff]   ;;  %v6125_v9 = vld [vmem:[#allocation8] ss:$8 sps:$4 sm:$0xff]  }
 0x131   :  { %1628 = vmatprep.subr.bf16.mxu0 %v5988_v10  ;;  %1800 = vmatprep.subr.bf16.mxu1 %v5991_v11  ;;  %v6127_v10 = vld [vmem:[#allocation8 + $0x4] ss:$8 sps:$4 sm:$0xff]   ;;  %v6130_v11 = vld [vmem:[#allocation8 + $0x14] ss:$8 sps:$4 sm:$0xff]  }
 0x132   :  { %1658 = vmatprep.mubr.bf16.mxu0 %v6821_v18  ;;  %1830 = vmatprep.mubr.bf16.mxu1 %v6821_v18  ;;  %v6137_v18 = vld [vmem:[#allocation8 + $0x40] ss:$8 sps:$4 sm:$0xff]  }
 0x134   :  { %1629 = vmatpush1.bf16.msra.mxu0 %v5986_v12  ;;  %1801 = vmatpush1.bf16.msra.mxu1 %v5989_v13  ;;  %v6128_v12 = vld [vmem:[#allocation8 + $0x10] ss:$8 sps:$4 sm:$0xff]   ;;  %v6133_v13 = vld [vmem:[#allocation8 + $0x24] ss:$8 sps:$4 sm:$0xff]  }
 0x135   :  { %1630 = vmatprep.subr.bf16.mxu0 %v5994_v14  ;;  %1802 = vmatprep.subr.bf16.mxu1 %v5997_v15  ;;  %v6131_v14 = vld [vmem:[#allocation8 + $0x20] ss:$8 sps:$4 sm:$0xff]   ;;  %v6136_v15 = vld [vmem:[#allocation8 + $0x34] ss:$8 sps:$4 sm:$0xff]  }
 0x138   :  { %1631 = vmatpush1.bf16.msra.mxu0 %v5992_v16  ;;  %1803 = vmatpush1.bf16.msra.mxu1 %v5995_v17  ;;  %v6134_v16 = vld [vmem:[#allocation8 + $0x30] ss:$8 sps:$4 sm:$0xff]   ;;  %v6139_v17 = vld [vmem:[#allocation8 + $0x44] ss:$8 sps:$4 sm:$0xff]  }
 0x139   :  { %1632 = vmatprep.subr.bf16.mxu0 %v6000_v19  ;;  %1804 = vmatprep.subr.bf16.mxu1 %v6003_v20  ;;  %v6142_v19 = vld [vmem:[#allocation8 + $0x54] ss:$8 sps:$4 sm:$0xff]   ;;  %v6140_v20 = vld [vmem:[#allocation8 + $0x50] ss:$8 sps:$4 sm:$0xff]  }
 0x13c   :  { %1633 = vmatpush1.bf16.msra.mxu0 %v5998_v21  ;;  %1805 = vmatpush1.bf16.msra.mxu1 %v6001_v22  ;;  %v6145_v21 = vld [vmem:[#allocation8 + $0x64] ss:$8 sps:$4 sm:$0xff]   ;;  %v6143_v22 = vld [vmem:[#allocation8 + $0x60] ss:$8 sps:$4 sm:$0xff]  }
 0x13d   :  { %1634 = vmatprep.subr.bf16.mxu0 %v6006_v23  ;;  %1806 = vmatprep.subr.bf16.mxu1 %v6009_v24  ;;  %v6148_v23 = vld [vmem:[#allocation8 + $0x74] ss:$8 sps:$4 sm:$0xff]   ;;  %v6146_v24 = vld [vmem:[#allocation8 + $0x70] ss:$8 sps:$4 sm:$0xff]  }
 0x140   :  { %1635 = vmatpush1.bf16.msra.mxu0 %v6004_v25  ;;  %1807 = vmatpush1.bf16.msra.mxu1 %v6007_v26  ;;  %v6151_v25 = vld [vmem:[#allocation8 + $0x84] ss:$8 sps:$4 sm:$0xff]   ;;  %v6149_v26 = vld [vmem:[#allocation8 + $0x80] ss:$8 sps:$4 sm:$0xff]  }
 0x141   :  { %1636 = vmatprep.subr.bf16.mxu0 %v6012_v27  ;;  %1808 = vmatprep.subr.bf16.mxu1 %v6015_v28  ;;  %v6154_v27 = vld [vmem:[#allocation8 + $0x94] ss:$8 sps:$4 sm:$0xff]   ;;  %v6152_v28 = vld [vmem:[#allocation8 + $0x90] ss:$8 sps:$4 sm:$0xff]  }
 0x144   :  { %1637 = vmatpush1.bf16.msra.mxu0 %v6010_v29  ;;  %1809 = vmatpush1.bf16.msra.mxu1 %v6013_v30  ;;  %v6157_v29 = vld [vmem:[#allocation8 + $0xa4] ss:$8 sps:$4 sm:$0xff]   ;;  %v6155_v30 = vld [vmem:[#allocation8 + $0xa0] ss:$8 sps:$4 sm:$0xff]  }
 0x145   :  { %1638 = vmatprep.subr.bf16.mxu0 %v6018_v31  ;;  %1810 = vmatprep.subr.bf16.mxu1 %v6021_v32  ;;  %v6160_v31 = vld [vmem:[#allocation8 + $0xb4] ss:$8 sps:$4 sm:$0xff]   ;;  %v6158_v32 = vld [vmem:[#allocation8 + $0xb0] ss:$8 sps:$4 sm:$0xff]  }
 0x148   :  { %1639 = vmatpush1.bf16.msra.mxu0 %v6016_v33  ;;  %1811 = vmatpush1.bf16.msra.mxu1 %v6019_v34  ;;  %v6163_v33 = vld [vmem:[#allocation8 + $0xc4] ss:$8 sps:$4 sm:$0xff]   ;;  %v6161_v34 = vld [vmem:[#allocation8 + $0xc0] ss:$8 sps:$4 sm:$0xff]  }
 0x149   :  { %1640 = vmatprep.subr.bf16.mxu0 %v6024_v35  ;;  %1812 = vmatprep.subr.bf16.mxu1 %v6027_v36  ;;  %v6166_v35 = vld [vmem:[#allocation8 + $0xd4] ss:$8 sps:$4 sm:$0xff]   ;;  %v6164_v36 = vld [vmem:[#allocation8 + $0xd0] ss:$8 sps:$4 sm:$0xff]  }
 0x14c   :  { %1641 = vmatpush1.bf16.msra.mxu0 %v6022_v37  ;;  %1813 = vmatpush1.bf16.msra.mxu1 %v6025_v38 }
 0x14d   :  { %2241 = vmatprep.subr.bf16.mxu0 %v6031_v39  ;;  %2527 = vmatprep.subr.bf16.mxu1 %v6127_v10  ;;  %v6109_v10 = vld [vmem:[#allocation7 + $0x1a4] ss:$8 sps:$4 sm:$0xff]  }
 0x14f   :  { %1659 = vmatmul.mubr.bf16.vlgmr.msra.gmra.mrb[0].mxu0 %v6028_v40  ;;  %1831 = vmatmul.mubr.bf16.vlgmr.msra.gmra.mrb[0].mxu1 %v6028_v40 }
 0x150   :  { %2242 = vmatpush1.bf16.msra.mxu0 %v6029_v41  ;;  %2528 = vmatpush1.bf16.msra.mxu1 %v6125_v9  ;;  %v6104_v9 = vld [vmem:[#allocation7 + $0x190] ss:$8 sps:$4 sm:$0xff]  }
 0x151   :  { %2243 = vmatprep.subr.bf16.mxu0 %v6034_v42  ;;  %2529 = vmatprep.subr.bf16.mxu1 %v6130_v11  ;;  %v6107_v11 = vld [vmem:[#allocation7 + $0x1a0] ss:$8 sps:$4 sm:$0xff]  }
 0x154   :  { %2244 = vmatpush1.bf16.msra.mxu0 %v6032_v43  ;;  %2530 = vmatpush1.bf16.msra.mxu1 %v6128_v12  ;;  %v6112_v12 = vld [vmem:[#allocation7 + $0x1b4] ss:$8 sps:$4 sm:$0xff]  }
 0x155   :  { %2245 = vmatprep.subr.bf16.mxu0 %v6037_v44  ;;  %2531 = vmatprep.subr.bf16.mxu1 %v6133_v13  ;;  %v6110_v13 = vld [vmem:[#allocation7 + $0x1b0] ss:$8 sps:$4 sm:$0xff]  }
 0x158   :  { %2246 = vmatpush1.bf16.msra.mxu0 %v6035_v45  ;;  %2532 = vmatpush1.bf16.msra.mxu1 %v6131_v14  ;;  %v6115_v14 = vld [vmem:[#allocation7 + $0x1c4] ss:$8 sps:$4 sm:$0xff]  }
 0x159   :  { %2247 = vmatprep.subr.bf16.mxu0 %v6040_v46  ;;  %2533 = vmatprep.subr.bf16.mxu1 %v6136_v15  ;;  %v6113_v15 = vld [vmem:[#allocation7 + $0x1c0] ss:$8 sps:$4 sm:$0xff]  }
 0x15c   :  { %2248 = vmatpush1.bf16.msra.mxu0 %v6038_v47  ;;  %2534 = vmatpush1.bf16.msra.mxu1 %v6134_v16  ;;  %v6118_v16 = vld [vmem:[#allocation7 + $0x1d4] ss:$8 sps:$4 sm:$0xff]  }
 0x15d   :  { %2249 = vmatprep.subr.bf16.mxu0 %v6043_v48  ;;  %2535 = vmatprep.subr.bf16.mxu1 %v6139_v17  ;;  %v6116_v17 = vld [vmem:[#allocation7 + $0x1d0] ss:$8 sps:$4 sm:$0xff]  }
 0x160   :  { %2250 = vmatpush1.bf16.msra.mxu0 %v6041_v49  ;;  %2536 = vmatpush1.bf16.msra.mxu1 %v6137_v18  ;;  %v6121_v18 = vld [vmem:[#allocation7 + $0x1e4] ss:$8 sps:$4 sm:$0xff]  }
 0x161   :  { %2251 = vmatprep.subr.bf16.mxu0 %v6046_v50  ;;  %2537 = vmatprep.subr.bf16.mxu1 %v6142_v19  ;;  %v6119_v19 = vld [vmem:[#allocation7 + $0x1e0] ss:$8 sps:$4 sm:$0xff]  }
 0x164   :  { %2252 = vmatpush1.bf16.msra.mxu0 %v6044_v51  ;;  %2538 = vmatpush1.bf16.msra.mxu1 %v6140_v20  ;;  %v6124_v20 = vld [vmem:[#allocation7 + $0x1f4] ss:$8 sps:$4 sm:$0xff]  }
 0x165   :  { %2253 = vmatprep.subr.bf16.mxu0 %v6049_v52  ;;  %2539 = vmatprep.subr.bf16.mxu1 %v6145_v21  ;;  %v6077_v52 = vld [vmem:[#allocation7 + $0x100] ss:$8 sps:$4 sm:$0xff]   ;;  %v6122_v21 = vld [vmem:[#allocation7 + $0x1f0] ss:$8 sps:$4 sm:$0xff]  }
 0x168   :  { %2254 = vmatpush1.bf16.msra.mxu0 %v6047_v53  ;;  %2540 = vmatpush1.bf16.msra.mxu1 %v6143_v22 }
 0x169   :  { %2255 = vmatprep.subr.bf16.mxu0 %v6052_v54  ;;  %2541 = vmatprep.subr.bf16.mxu1 %v6148_v23  ;;  %v6082_v54 = vld [vmem:[#allocation7 + $0x114] ss:$8 sps:$4 sm:$0xff]  }
 0x16c   :  { %2256 = vmatpush1.bf16.msra.mxu0 %v6050_v55  ;;  %2542 = vmatpush1.bf16.msra.mxu1 %v6146_v24  ;;  %v6169_v24 = vld [vmem:[#allocation8 + $0xe4] ss:$8 sps:$4 sm:$0xff]  }
 0x16d   :  { %2257 = vmatprep.subr.bf16.mxu0 %v6055_v56  ;;  %2543 = vmatprep.subr.bf16.mxu1 %v6151_v25  ;;  %v6167_v25 = vld [vmem:[#allocation8 + $0xe0] ss:$8 sps:$4 sm:$0xff]  }
 0x170   :  { %2258 = vmatpush1.bf16.msra.mxu0 %v6053_v57  ;;  %2544 = vmatpush1.bf16.msra.mxu1 %v6149_v26  ;;  %v6080_v57 = vld [vmem:[#allocation7 + $0x110] ss:$8 sps:$4 sm:$0xff]   ;;  %v6172_v26 = vld [vmem:[#allocation8 + $0xf4] ss:$8 sps:$4 sm:$0xff]  }
 0x171   :  { %2259 = vmatprep.subr.bf16.mxu0 %v6058_v58  ;;  %2545 = vmatprep.subr.bf16.mxu1 %v6154_v27  ;;  %v6085_v58 = vld [vmem:[#allocation7 + $0x124] ss:$8 sps:$4 sm:$0xff]   ;;  %v6170_v27 = vld [vmem:[#allocation8 + $0xf0] ss:$8 sps:$4 sm:$0xff]  }
 0x174   :  { %2260 = vmatpush1.bf16.msra.mxu0 %v6056_v59  ;;  %2546 = vmatpush1.bf16.msra.mxu1 %v6152_v28  ;;  %v6083_v59 = vld [vmem:[#allocation7 + $0x120] ss:$8 sps:$4 sm:$0xff]   ;;  %v6175_v28 = vld [vmem:[#allocation10 + $0x4] ss:$16 sps:$4 sm:$0xff]  }
 0x175   :  { %2261 = vmatprep.subr.bf16.mxu0 %v6061_v60  ;;  %2547 = vmatprep.subr.bf16.mxu1 %v6157_v29  ;;  %v6088_v60 = vld [vmem:[#allocation7 + $0x134] ss:$8 sps:$4 sm:$0xff]   ;;  %v6176_v29 = vld [vmem:[#allocation10 + $0x8] ss:$16 sps:$4 sm:$0xff]  }
 0x178   :  { %2262 = vmatpush1.bf16.msra.mxu0 %v6059_v61  ;;  %2548 = vmatpush1.bf16.msra.mxu1 %v6155_v30  ;;  %v6086_v61 = vld [vmem:[#allocation7 + $0x130] ss:$8 sps:$4 sm:$0xff]   ;;  %v6178_v30 = vld [vmem:[#allocation10 + $0xc] ss:$16 sps:$4 sm:$0xff]  }
 0x179   :  { %2263 = vmatprep.subr.bf16.mxu0 %v6064_v62  ;;  %2549 = vmatprep.subr.bf16.mxu1 %v6160_v31  ;;  %v6091_v62 = vld [vmem:[#allocation7 + $0x144] ss:$8 sps:$4 sm:$0xff]  }
 0x17a   :  { %v6184_v31 = vld [vmem:[#allocation10 + $0x2c] ss:$16 sps:$4 sm:$0xff]  }
 0x17c   :  { %2264 = vmatpush1.bf16.msra.mxu0 %v6062_v63  ;;  %2550 = vmatpush1.bf16.msra.mxu1 %v6158_v32  ;;  %v6089_v63 = vld [vmem:[#allocation7 + $0x140] ss:$8 sps:$4 sm:$0xff]  }
 0x17d   :  { %2265 = vmatprep.subr.bf16.mxu0 %v6067_v0  ;;  %2551 = vmatprep.subr.bf16.mxu1 %v6163_v33  ;;  %v6094_v0 = vld [vmem:[#allocation7 + $0x154] ss:$8 sps:$4 sm:$0xff]   ;;  %v6182_v32 = vld [vmem:[#allocation10 + $0x28] ss:$16 sps:$4 sm:$0xff]  }
 0x17e   :  { %v6190_v33 = vld [vmem:[#allocation10 + $0x4c] ss:$16 sps:$4 sm:$0xff]  }
 0x180   :  { %2266 = vmatpush1.bf16.msra.mxu0 %v6065_v1  ;;  %2552 = vmatpush1.bf16.msra.mxu1 %v6161_v34  ;;  %v6092_v1 = vld [vmem:[#allocation7 + $0x150] ss:$8 sps:$4 sm:$0xff]  }
 0x181   :  { %2267 = vmatprep.subr.bf16.mxu0 %v6070_v2  ;;  %2553 = vmatprep.subr.bf16.mxu1 %v6166_v35  ;;  %v6097_v2 = vld [vmem:[#allocation7 + $0x164] ss:$8 sps:$4 sm:$0xff]   ;;  %v6188_v34 = vld [vmem:[#allocation10 + $0x48] ss:$16 sps:$4 sm:$0xff]  }
 0x182   :  { %v6196_v35 = vld [vmem:[#allocation10 + $0x6c] ss:$16 sps:$4 sm:$0xff]  }
 0x184   :  { %2268 = vmatpush1.bf16.msra.mxu0 %v6068_v3  ;;  %2554 = vmatpush1.bf16.msra.mxu1 %v6164_v36  ;;  %v6095_v3 = vld [vmem:[#allocation7 + $0x160] ss:$8 sps:$4 sm:$0xff]  }
 0x185   :  { %2269 = vmatprep.subr.bf16.mxu0 %v6073_v4  ;;  %v6100_v4 = vld [vmem:[#allocation7 + $0x174] ss:$8 sps:$4 sm:$0xff]   ;;  %2555 = vmatprep.subr.bf16.mxu1 %v6169_v24  ;;  %v6194_v36 = vld [vmem:[#allocation10 + $0x68] ss:$16 sps:$4 sm:$0xff]  }
 0x186   :  { %v6241_v24 = vld [vmem:[#allocation10 + $0x164] ss:$16 sps:$4 sm:$0xff]  }
 0x188   :  { %2270 = vmatpush1.bf16.msra.mxu0 %v6071_v5  ;;  %v6098_v5 = vld [vmem:[#allocation7 + $0x170] ss:$8 sps:$4 sm:$0xff]   ;;  %2556 = vmatpush1.bf16.msra.mxu1 %v6167_v25 }
 0x189   :  { %2271 = vmatprep.subr.bf16.mxu0 %v6076_v6  ;;  %v6103_v6 = vld [vmem:[#allocation7 + $0x184] ss:$8 sps:$4 sm:$0xff]   ;;  %2557 = vmatprep.subr.bf16.mxu1 %v6172_v26  ;;  %v6239_v25 = vld [vmem:[#allocation10 + $0x160] ss:$16 sps:$4 sm:$0xff]  }
 0x18a   :  { %v6247_v26 = vld [vmem:[#allocation10 + $0x184] ss:$16 sps:$4 sm:$0xff]  }
 0x18c   :  { %2272 = vmatpush1.bf16.msra.mxu0 %v6074_v7  ;;  %v6101_v7 = vld [vmem:[#allocation7 + $0x180] ss:$8 sps:$4 sm:$0xff]   ;;  %2558 = vmatpush1.bf16.msra.mxu1 %v6170_v27 }
 0x18d   :  { %2284 = vmatprep.subr.bf16.mxu0 %v6079_v8  ;;  %v6106_v8 = vld [vmem:[#allocation7 + $0x194] ss:$8 sps:$4 sm:$0xff]   ;;  %2962 = vmatprep.subr.bf16.mxu1 %v6175_v28  ;;  %v6245_v27 = vld [vmem:[#allocation10 + $0x180] ss:$16 sps:$4 sm:$0xff]  }
 0x18e   :  { %v6253_v28 = vld [vmem:[#allocation10 + $0x1a4] ss:$16 sps:$4 sm:$0xff]  }
 0x222   :  { %v1660_v37 = vpop.f32.mrb[0].mxu0  ;;  %v1832_v38 = vpop.f32.mrb[0].mxu1 }
 0x223   :  { %v1662_v39 = vpop.f32.mrb[1].mxu0  ;;  %v1834_v40 = vpop.f32.mrb[1].mxu1 }
 0x224   :  { %v1664_v41 = vpop.f32.mrb[2].mxu0  ;;  %v1836_v42 = vpop.f32.mrb[2].mxu1 }
 0x225   :  { %v1841_v43 = vpack.c.bf16 %v1664_v41, %v1660_v37  ;;  %v6948_v44 = vpack.c.bf16 %v1836_v42, %v1832_v38  ;;  %v1666_v45 = vpop.f32.mrb[3].mxu0  ;;  %v1838_v46 = vpop.f32.mrb[3].mxu1  ;;  %v6202_v37 = vld [vmem:[#allocation10 + $0x8c] ss:$16 sps:$4 sm:$0xff]   ;;  %v6200_v38 = vld [vmem:[#allocation10 + $0x88] ss:$16 sps:$4 sm:$0xff]  }
 0x226   :  { %v1842_v47 = vpack.c.bf16 %v1666_v45, %v1662_v39  ;;  %v1844_v48 = vpack.c.bf16 %v1838_v46, %v1834_v40  ;;  %v6208_v39 = vld [vmem:[#allocation10 + $0xac] ss:$16 sps:$4 sm:$0xff]   ;;  %v6206_v40 = vld [vmem:[#allocation10 + $0xa8] ss:$16 sps:$4 sm:$0xff]  }
 0x227   :  { %v1849_v49 = vmul.bf16 1045249613, %v1841_v43  ;;  %vm1845_vm0 = vcmp.ge.bf16.partialorder %v1841_v43, 0  ;;  %v1851_v22 = vmul.bf16 1045249613, %v6948_v44  ;;  %vm1847_vm3 = vcmp.ge.bf16.partialorder %v6948_v44, 0 }
 0x228   :  { %v1850_v50 = vmul.bf16 1045249613, %v1842_v47  ;;  %v1852_v51 = vmul.bf16 1045249613, %v1844_v48  ;;  %vm1846_vm1 = vcmp.ge.bf16.partialorder %v1842_v47, 0  ;;  %vm1848_vm2 = vcmp.ge.bf16.partialorder %v1844_v48, 0 }
 0x229   :  { %v1853_v55 = vsel %vm1845_vm0, %v1841_v43, %v1849_v49  ;;  %v1855_v23 = vsel %vm1847_vm3, %v6948_v44, %v1851_v22  ;;  %v6214_v41 = vld [vmem:[#allocation10 + $0xcc] ss:$16 sps:$4 sm:$0xff]   ;;  %v6212_v42 = vld [vmem:[#allocation10 + $0xc8] ss:$16 sps:$4 sm:$0xff]   ;;  %v6235_v22 = vld [vmem:[#allocation10 + $0x144] ss:$16 sps:$4 sm:$0xff]  }
 0x22a   :  { %v1854_v53 = vsel %vm1846_vm1, %v1842_v47, %v1850_v50  ;;  %v1856_v56 = vsel %vm1848_vm2, %v1844_v48, %v1852_v51  ;;  %v6220_v43 = vld [vmem:[#allocation10 + $0xec] ss:$16 sps:$4 sm:$0xff]   ;;  %v6218_v44 = vld [vmem:[#allocation10 + $0xe8] ss:$16 sps:$4 sm:$0xff]  }
 0x22b   :  { %2273 = vmatprep.mubr.bf16.mxu0 %v1854_v53  ;;  %v6226_v45 = vld [vmem:[#allocation10 + $0x10c] ss:$16 sps:$4 sm:$0xff]   ;;  %v6224_v46 = vld [vmem:[#allocation10 + $0x108] ss:$16 sps:$4 sm:$0xff]  }
 0x22c   :  { %2274 = vmatmul.mubr.bf16.vlgmr.msra.gmra.mrb[4].mxu0 %v1853_v55  ;;  %v6232_v47 = vld [vmem:[#allocation10 + $0x12c] ss:$16 sps:$4 sm:$0xff]   ;;  %v6230_v48 = vld [vmem:[#allocation10 + $0x128] ss:$16 sps:$4 sm:$0xff]  }
 0x22d   :  { %2285 = vmatpush1.bf16.msra.mxu0 %v6077_v52  ;;  %2316 = vmatprep.mubr.bf16.mxu0 %v1856_v56  ;;  %v6238_v49 = vld [vmem:[#allocation10 + $0x14c] ss:$16 sps:$4 sm:$0xff]   ;;  %v6236_v50 = vld [vmem:[#allocation10 + $0x148] ss:$16 sps:$4 sm:$0xff]  }
 0x22e   :  { %2286 = vmatprep.subr.bf16.mxu0 %v6082_v54  ;;  %v6244_v51 = vld [vmem:[#allocation10 + $0x16c] ss:$16 sps:$4 sm:$0xff]   ;;  %v6242_v52 = vld [vmem:[#allocation10 + $0x168] ss:$16 sps:$4 sm:$0xff]  }
 0x22f   :  { %v6250_v53 = vld [vmem:[#allocation10 + $0x18c] ss:$16 sps:$4 sm:$0xff]   ;;  %v6248_v54 = vld [vmem:[#allocation10 + $0x188] ss:$16 sps:$4 sm:$0xff]  }
 0x230   :  { %v6256_v55 = vld [vmem:[#allocation10 + $0x1ac] ss:$16 sps:$4 sm:$0xff]   ;;  %v6254_v56 = vld [vmem:[#allocation10 + $0x1a8] ss:$16 sps:$4 sm:$0xff]  }
 0x231   :  { %2287 = vmatpush1.bf16.msra.mxu0 %v6080_v57 }
 0x232   :  { %2288 = vmatprep.subr.bf16.mxu0 %v6085_v58 }
 0x235   :  { %2289 = vmatpush1.bf16.msra.mxu0 %v6083_v59 }
 0x236   :  { %2290 = vmatprep.subr.bf16.mxu0 %v6088_v60 }
 0x239   :  { %2291 = vmatpush1.bf16.msra.mxu0 %v6086_v61 }
 0x23a   :  { %2292 = vmatprep.subr.bf16.mxu0 %v6091_v62 }
 0x23d   :  { %2293 = vmatpush1.bf16.msra.mxu0 %v6089_v63 }
 0x23e   :  { %2294 = vmatprep.subr.bf16.mxu0 %v6094_v0 }
 0x241   :  { %2295 = vmatpush1.bf16.msra.mxu0 %v6092_v1  ;;  %v6173_v1 = vld [vmem:[#allocation10] ss:$16 sps:$4 sm:$0xff]  }
 0x242   :  { %2296 = vmatprep.subr.bf16.mxu0 %v6097_v2 }
 0x245   :  { %2297 = vmatpush1.bf16.msra.mxu0 %v6095_v3  ;;  %v6181_v3 = vld [vmem:[#allocation10 + $0x24] ss:$16 sps:$4 sm:$0xff]  }
 0x246   :  { %2298 = vmatprep.subr.bf16.mxu0 %v6100_v4 }
 0x249   :  { %2299 = vmatpush1.bf16.msra.mxu0 %v6098_v5  ;;  %v6179_v5 = vld [vmem:[#allocation10 + $0x20] ss:$16 sps:$4 sm:$0xff]  }
 0x24a   :  { %2300 = vmatprep.subr.bf16.mxu0 %v6103_v6  ;;  %v6187_v6 = vld [vmem:[#allocation10 + $0x44] ss:$16 sps:$4 sm:$0xff]  }
 0x24d   :  { %2301 = vmatpush1.bf16.msra.mxu0 %v6101_v7  ;;  %v6185_v7 = vld [vmem:[#allocation10 + $0x40] ss:$16 sps:$4 sm:$0xff]  }
 0x24e   :  { %2302 = vmatprep.subr.bf16.mxu0 %v6106_v8  ;;  %v6193_v8 = vld [vmem:[#allocation10 + $0x64] ss:$16 sps:$4 sm:$0xff]  }
 0x251   :  { %2303 = vmatpush1.bf16.msra.mxu0 %v6104_v9  ;;  %v6191_v9 = vld [vmem:[#allocation10 + $0x60] ss:$16 sps:$4 sm:$0xff]  }
 0x252   :  { %2304 = vmatprep.subr.bf16.mxu0 %v6109_v10  ;;  %v6199_v10 = vld [vmem:[#allocation10 + $0x84] ss:$16 sps:$4 sm:$0xff]  }
 0x255   :  { %2305 = vmatpush1.bf16.msra.mxu0 %v6107_v11  ;;  %v6197_v11 = vld [vmem:[#allocation10 + $0x80] ss:$16 sps:$4 sm:$0xff]  }
 0x256   :  { %2306 = vmatprep.subr.bf16.mxu0 %v6112_v12  ;;  %v6205_v12 = vld [vmem:[#allocation10 + $0xa4] ss:$16 sps:$4 sm:$0xff]  }
 0x259   :  { %2307 = vmatpush1.bf16.msra.mxu0 %v6110_v13  ;;  %v6203_v13 = vld [vmem:[#allocation10 + $0xa0] ss:$16 sps:$4 sm:$0xff]  }
 0x25a   :  { %2308 = vmatprep.subr.bf16.mxu0 %v6115_v14  ;;  %v6211_v14 = vld [vmem:[#allocation10 + $0xc4] ss:$16 sps:$4 sm:$0xff]  }
 0x25d   :  { %2309 = vmatpush1.bf16.msra.mxu0 %v6113_v15  ;;  %v6209_v15 = vld [vmem:[#allocation10 + $0xc0] ss:$16 sps:$4 sm:$0xff]  }
 0x25e   :  { %2310 = vmatprep.subr.bf16.mxu0 %v6118_v16  ;;  %v6217_v16 = vld [vmem:[#allocation10 + $0xe4] ss:$16 sps:$4 sm:$0xff]  }
 0x261   :  { %2311 = vmatpush1.bf16.msra.mxu0 %v6116_v17  ;;  %v6215_v17 = vld [vmem:[#allocation10 + $0xe0] ss:$16 sps:$4 sm:$0xff]  }
 0x262   :  { %2312 = vmatprep.subr.bf16.mxu0 %v6121_v18  ;;  %v6223_v18 = vld [vmem:[#allocation10 + $0x104] ss:$16 sps:$4 sm:$0xff]  }
 0x265   :  { %2313 = vmatpush1.bf16.msra.mxu0 %v6119_v19  ;;  %v6221_v19 = vld [vmem:[#allocation10 + $0x100] ss:$16 sps:$4 sm:$0xff]  }
 0x266   :  { %2314 = vmatprep.subr.bf16.mxu0 %v6124_v20  ;;  %v6229_v20 = vld [vmem:[#allocation10 + $0x124] ss:$16 sps:$4 sm:$0xff]  }
 0x269   :  { %2315 = vmatpush1.bf16.msra.mxu0 %v6122_v21  ;;  %v6227_v21 = vld [vmem:[#allocation10 + $0x120] ss:$16 sps:$4 sm:$0xff]  }
 0x26a   :  { %3005 = vmatprep.subr.bf16.mxu0 %v6178_v30  ;;  %v6259_v30 = vld [vmem:[#allocation10 + $0x1c4] ss:$16 sps:$4 sm:$0xff]  }
 0x26c   :  { %2317 = vmatmul.mubr.bf16.vlgmr.msra.gmra.mrb[4].mxu0 %v1855_v23  ;;  %v6233_v23 = vld [vmem:[#allocation10 + $0x140] ss:$16 sps:$4 sm:$0xff]  }
 0x26d   :  { %3006 = vmatpush1.bf16.msra.mxu0 %v6176_v29  ;;  %v6251_v29 = vld [vmem:[#allocation10 + $0x1a0] ss:$16 sps:$4 sm:$0xff]  }
 0x26e   :  { %3007 = vmatprep.subr.bf16.mxu0 %v6184_v31  ;;  %v6262_v31 = vld [vmem:[#allocation10 + $0x1cc] ss:$16 sps:$4 sm:$0xff]  }
 0x271   :  { %3008 = vmatpush1.bf16.msra.mxu0 %v6182_v32  ;;  %v6257_v32 = vld [vmem:[#allocation10 + $0x1c0] ss:$16 sps:$4 sm:$0xff]  }
 0x272   :  { %3009 = vmatprep.subr.bf16.mxu0 %v6190_v33  ;;  %v6260_v33 = vld [vmem:[#allocation10 + $0x1c8] ss:$16 sps:$4 sm:$0xff]  }
 0x275   :  { %3010 = vmatpush1.bf16.msra.mxu0 %v6188_v34  ;;  %v6265_v34 = vld [vmem:[#allocation10 + $0x1e4] ss:$16 sps:$4 sm:$0xff]  }
 0x276   :  { %3011 = vmatprep.subr.bf16.mxu0 %v6196_v35  ;;  %v6268_v35 = vld [vmem:[#allocation10 + $0x1ec] ss:$16 sps:$4 sm:$0xff]  }
 0x279   :  { %3012 = vmatpush1.bf16.msra.mxu0 %v6194_v36  ;;  %v6263_v36 = vld [vmem:[#allocation10 + $0x1e0] ss:$16 sps:$4 sm:$0xff]  }
 0x27a   :  { %3013 = vmatprep.subr.bf16.mxu0 %v6202_v37  ;;  %v6266_v37 = vld [vmem:[#allocation10 + $0x1e8] ss:$16 sps:$4 sm:$0xff]  }
 0x27d   :  { %3014 = vmatpush1.bf16.msra.mxu0 %v6200_v38  ;;  %v6271_v38 = vld [vmem:[#allocation11 + $0x4] ss:$28 sps:$4 sm:$0xff]  }
 0x27e   :  { %3015 = vmatprep.subr.bf16.mxu0 %v6208_v39  ;;  %v6274_v39 = vld [vmem:[#allocation11 + $0xc] ss:$28 sps:$4 sm:$0xff]  }
 0x281   :  { %3016 = vmatpush1.bf16.msra.mxu0 %v6206_v40 }
 0x282   :  { %3017 = vmatprep.subr.bf16.mxu0 %v6214_v41 }
 0x285   :  { %3018 = vmatpush1.bf16.msra.mxu0 %v6212_v42 }
 0x286   :  { %3019 = vmatprep.subr.bf16.mxu0 %v6220_v43 }
 0x289   :  { %3020 = vmatpush1.bf16.msra.mxu0 %v6218_v44 }
 0x28a   :  { %3021 = vmatprep.subr.bf16.mxu0 %v6226_v45 }
 0x28d   :  { %3022 = vmatpush1.bf16.msra.mxu0 %v6224_v46 }
 0x28e   :  { %3023 = vmatprep.subr.bf16.mxu0 %v6232_v47 }
 0x291   :  { %3024 = vmatpush1.bf16.msra.mxu0 %v6230_v48  ;;  %v6269_v48 = vld [vmem:[#allocation11] ss:$28 sps:$4 sm:$0xff]  }
 0x292   :  { %3025 = vmatprep.subr.bf16.mxu0 %v6238_v49  ;;  %v6272_v49 = vld [vmem:[#allocation11 + $0x8] ss:$28 sps:$4 sm:$0xff]  }
 0x295   :  { %3026 = vmatpush1.bf16.msra.mxu0 %v6236_v50 }
 0x296   :  { %3027 = vmatprep.subr.bf16.mxu0 %v6244_v51  ;;  %v6277_v51 = vld [vmem:[#allocation11 + $0x3c] ss:$28 sps:$4 sm:$0xff]  }
 0x299   :  { %3028 = vmatpush1.bf16.msra.mxu0 %v6242_v52  ;;  %v6280_v52 = vld [vmem:[#allocation11 + $0x44] ss:$28 sps:$4 sm:$0xff]  }
 0x29a   :  { %3029 = vmatprep.subr.bf16.mxu0 %v6250_v53 }
 0x29d   :  { %3030 = vmatpush1.bf16.msra.mxu0 %v6248_v54  ;;  %v6275_v54 = vld [vmem:[#allocation11 + $0x38] ss:$28 sps:$4 sm:$0xff]  }
 0x29e   :  { %3031 = vmatprep.subr.bf16.mxu0 %v6256_v55  ;;  %v6278_v55 = vld [vmem:[#allocation11 + $0x40] ss:$28 sps:$4 sm:$0xff]  }
 0x2a1   :  { %3032 = vmatpush1.bf16.msra.mxu0 %v6254_v56  ;;  %v6283_v56 = vld [vmem:[#allocation11 + $0x74] ss:$28 sps:$4 sm:$0xff]  }
 0x2a2   :  { %3033 = vmatprep.subr.bf16.mxu0 %v6262_v31  ;;  %v6338_v31 = vld [vmem:[#allocation11 + $0x270] ss:$28 sps:$4 sm:$0xff]  }
 0x2a5   :  { %3034 = vmatpush1.bf16.msra.mxu0 %v6260_v33  ;;  %v6346_v33 = vld [vmem:[#allocation11 + $0x2ac] ss:$28 sps:$4 sm:$0xff]  }
 0x2a6   :  { %3035 = vmatprep.subr.bf16.mxu0 %v6268_v35  ;;  %v6344_v35 = vld [vmem:[#allocation11 + $0x2a8] ss:$28 sps:$4 sm:$0xff]  }
 0x2a9   :  { %3036 = vmatpush1.bf16.msra.mxu0 %v6266_v37  ;;  %v6352_v37 = vld [vmem:[#allocation11 + $0x2e4] ss:$28 sps:$4 sm:$0xff]  }
 0x2aa   :  { %4558 = vmatprep.subr.bf16.mxu0 %v6274_v39  ;;  %v6350_v39 = vld [vmem:[#allocation11 + $0x2e0] ss:$28 sps:$4 sm:$0xff]  }
 0x33f   :  { %v2318_v57 = vpop.f32.mrb[4].mxu0 }
 0x340   :  { %v2320_v58 = vpop.f32.mrb[5].mxu0 }
 0x341   :  { %v2322_v59 = vpop.f32.mrb[6].mxu0 }
 0x342   :  { %v2327_v60 = vpack.c.bf16 %v2322_v59, %v2318_v57  ;;  %v2324_v61 = vpop.f32.mrb[7].mxu0  ;;  %v6286_v57 = vld [vmem:[#allocation11 + $0x7c] ss:$28 sps:$4 sm:$0xff]  }
 0x343   :  { %v2328_v62 = vpack.c.bf16 %v2324_v61, %v2320_v58  ;;  %v6281_v58 = vld [vmem:[#allocation11 + $0x70] ss:$28 sps:$4 sm:$0xff]   ;;  %v6284_v59 = vld [vmem:[#allocation11 + $0x78] ss:$28 sps:$4 sm:$0xff]  }
 0x344   :  { %v2331_v63 = vmul.bf16 1045249613, %v2327_v60  ;;  %vm2329_vm4 = vcmp.ge.bf16.partialorder %v2327_v60, 0  ;;  %v6292_v61 = vld [vmem:[#allocation11 + $0xb4] ss:$28 sps:$4 sm:$0xff]  }
 0x345   :  { %v2332_v0 = vmul.bf16 1045249613, %v2328_v62  ;;  %vm2330_vm5 = vcmp.ge.bf16.partialorder %v2328_v62, 0 }
 0x346   :  { %v2333_v4 = vsel %vm2329_vm4, %v2327_v60, %v2331_v63  ;;  %v6289_v60 = vld [vmem:[#allocation11 + $0xac] ss:$28 sps:$4 sm:$0xff]  }
 0x347   :  { %v2334_v2 = vsel %vm2330_vm5, %v2328_v62, %v2332_v0  ;;  %v6287_v62 = vld [vmem:[#allocation11 + $0xa8] ss:$28 sps:$4 sm:$0xff]   ;;  %v6290_v63 = vld [vmem:[#allocation11 + $0xb0] ss:$28 sps:$4 sm:$0xff]  }
 0x348   :  { %2559 = vmatprep.mubr.bf16.mxu1 %v2334_v2  ;;  %v6295_v0 = vld [vmem:[#allocation11 + $0xe4] ss:$28 sps:$4 sm:$0xff]  }
 0x349   :  { %2560 = vmatmul.mubr.bf16.vlgmr.msra.gmra.mrb[4].mxu1 %v2333_v4  ;;  %v6293_v2 = vld [vmem:[#allocation11 + $0xe0] ss:$28 sps:$4 sm:$0xff]  }
 0x34a   :  { %2963 = vmatpush1.bf16.msra.mxu1 %v6173_v1  ;;  %v6298_v1 = vld [vmem:[#allocation11 + $0xec] ss:$28 sps:$4 sm:$0xff]   ;;  %v6301_v4 = vld [vmem:[#allocation11 + $0x11c] ss:$28 sps:$4 sm:$0xff]  }
 0x34b   :  { %2964 = vmatprep.subr.bf16.mxu1 %v6181_v3  ;;  %v6296_v3 = vld [vmem:[#allocation11 + $0xe8] ss:$28 sps:$4 sm:$0xff]  }
 0x34e   :  { %2965 = vmatpush1.bf16.msra.mxu1 %v6179_v5  ;;  %v6304_v5 = vld [vmem:[#allocation11 + $0x124] ss:$28 sps:$4 sm:$0xff]  }
 0x34f   :  { %2966 = vmatprep.subr.bf16.mxu1 %v6187_v6  ;;  %v6299_v6 = vld [vmem:[#allocation11 + $0x118] ss:$28 sps:$4 sm:$0xff]  }
 0x352   :  { %2967 = vmatpush1.bf16.msra.mxu1 %v6185_v7  ;;  %v6302_v7 = vld [vmem:[#allocation11 + $0x120] ss:$28 sps:$4 sm:$0xff]  }
 0x353   :  { %2968 = vmatprep.subr.bf16.mxu1 %v6193_v8  ;;  %v6307_v8 = vld [vmem:[#allocation11 + $0x154] ss:$28 sps:$4 sm:$0xff]  }
 0x356   :  { %2969 = vmatpush1.bf16.msra.mxu1 %v6191_v9  ;;  %v6310_v9 = vld [vmem:[#allocation11 + $0x15c] ss:$28 sps:$4 sm:$0xff]  }
 0x357   :  { %2970 = vmatprep.subr.bf16.mxu1 %v6199_v10  ;;  %v6305_v10 = vld [vmem:[#allocation11 + $0x150] ss:$28 sps:$4 sm:$0xff]  }
 0x35a   :  { %2971 = vmatpush1.bf16.msra.mxu1 %v6197_v11  ;;  %v6308_v11 = vld [vmem:[#allocation11 + $0x158] ss:$28 sps:$4 sm:$0xff]  }
 0x35b   :  { %2972 = vmatprep.subr.bf16.mxu1 %v6205_v12  ;;  %v6313_v12 = vld [vmem:[#allocation11 + $0x18c] ss:$28 sps:$4 sm:$0xff]  }
 0x35e   :  { %2973 = vmatpush1.bf16.msra.mxu1 %v6203_v13  ;;  %v6316_v13 = vld [vmem:[#allocation11 + $0x194] ss:$28 sps:$4 sm:$0xff]  }
 0x35f   :  { %2974 = vmatprep.subr.bf16.mxu1 %v6211_v14  ;;  %v6311_v14 = vld [vmem:[#allocation11 + $0x188] ss:$28 sps:$4 sm:$0xff]  }
 0x362   :  { %2975 = vmatpush1.bf16.msra.mxu1 %v6209_v15  ;;  %v6314_v15 = vld [vmem:[#allocation11 + $0x190] ss:$28 sps:$4 sm:$0xff]  }
 0x363   :  { %2976 = vmatprep.subr.bf16.mxu1 %v6217_v16  ;;  %v6319_v16 = vld [vmem:[#allocation11 + $0x1c4] ss:$28 sps:$4 sm:$0xff]  }
 0x366   :  { %2977 = vmatpush1.bf16.msra.mxu1 %v6215_v17  ;;  %v6322_v17 = vld [vmem:[#allocation11 + $0x1cc] ss:$28 sps:$4 sm:$0xff]  }
 0x367   :  { %2978 = vmatprep.subr.bf16.mxu1 %v6223_v18  ;;  %v6317_v18 = vld [vmem:[#allocation11 + $0x1c0] ss:$28 sps:$4 sm:$0xff]  }
 0x36a   :  { %2979 = vmatpush1.bf16.msra.mxu1 %v6221_v19  ;;  %v6320_v19 = vld [vmem:[#allocation11 + $0x1c8] ss:$28 sps:$4 sm:$0xff]  }
 0x36b   :  { %2980 = vmatprep.subr.bf16.mxu1 %v6229_v20  ;;  %v6325_v20 = vld [vmem:[#allocation11 + $0x1fc] ss:$28 sps:$4 sm:$0xff]  }
 0x36e   :  { %2981 = vmatpush1.bf16.msra.mxu1 %v6227_v21  ;;  %v6328_v21 = vld [vmem:[#allocation11 + $0x204] ss:$28 sps:$4 sm:$0xff]  }
 0x36f   :  { %2982 = vmatprep.subr.bf16.mxu1 %v6235_v22  ;;  %v6323_v22 = vld [vmem:[#allocation11 + $0x1f8] ss:$28 sps:$4 sm:$0xff]  }
 0x372   :  { %2983 = vmatpush1.bf16.msra.mxu1 %v6233_v23  ;;  %v6326_v23 = vld [vmem:[#allocation11 + $0x200] ss:$28 sps:$4 sm:$0xff]  }
 0x373   :  { %2984 = vmatprep.subr.bf16.mxu1 %v6241_v24  ;;  %v6331_v24 = vld [vmem:[#allocation11 + $0x234] ss:$28 sps:$4 sm:$0xff]  }
 0x376   :  { %2985 = vmatpush1.bf16.msra.mxu1 %v6239_v25  ;;  %v6334_v25 = vld [vmem:[#allocation11 + $0x23c] ss:$28 sps:$4 sm:$0xff]  }
 0x377   :  { %2986 = vmatprep.subr.bf16.mxu1 %v6247_v26  ;;  %v6329_v26 = vld [vmem:[#allocation11 + $0x230] ss:$28 sps:$4 sm:$0xff]  }
 0x37a   :  { %2987 = vmatpush1.bf16.msra.mxu1 %v6245_v27  ;;  %v6332_v27 = vld [vmem:[#allocation11 + $0x238] ss:$28 sps:$4 sm:$0xff]  }
 0x37b   :  { %2988 = vmatprep.subr.bf16.mxu1 %v6253_v28  ;;  %v6337_v28 = vld [vmem:[#allocation11 + $0x26c] ss:$28 sps:$4 sm:$0xff]  }
 0x37e   :  { %2989 = vmatpush1.bf16.msra.mxu1 %v6251_v29  ;;  %v6340_v29 = vld [vmem:[#allocation11 + $0x274] ss:$28 sps:$4 sm:$0xff]  }
 0x37f   :  { %2990 = vmatprep.subr.bf16.mxu1 %v6259_v30  ;;  %v6335_v30 = vld [vmem:[#allocation11 + $0x268] ss:$28 sps:$4 sm:$0xff]  }
 0x382   :  { %2991 = vmatpush1.bf16.msra.mxu1 %v6257_v32  ;;  %v6343_v32 = vld [vmem:[#allocation11 + $0x2a4] ss:$28 sps:$4 sm:$0xff]  }
 0x383   :  { %2992 = vmatprep.subr.bf16.mxu1 %v6265_v34  ;;  %v6341_v34 = vld [vmem:[#allocation11 + $0x2a0] ss:$28 sps:$4 sm:$0xff]  }
 0x386   :  { %2993 = vmatpush1.bf16.msra.mxu1 %v6263_v36  ;;  %v6349_v36 = vld [vmem:[#allocation11 + $0x2dc] ss:$28 sps:$4 sm:$0xff]  }
 0x387   :  { %4472 = vmatprep.subr.bf16.mxu1 %v6271_v38  ;;  %v6347_v38 = vld [vmem:[#allocation11 + $0x2d8] ss:$28 sps:$4 sm:$0xff]  }
 0x41c   :  { %v2561_v40 = vpop.f32.mrb[4].mxu1 }
 0x41d   :  { %v2563_v41 = vpop.f32.mrb[5].mxu1 }
 0x41e   :  { %v2565_v42 = vpop.f32.mrb[6].mxu1 }
 0x41f   :  { %v2570_v43 = vpack.c.bf16 %v2565_v42, %v2561_v40  ;;  %v2567_v44 = vpop.f32.mrb[7].mxu1  ;;  %v6355_v40 = vld [vmem:[#allocation11 + $0x314] ss:$28 sps:$4 sm:$0xff]  }
 0x420   :  { %v2571_v45 = vpack.c.bf16 %v2567_v44, %v2563_v41  ;;  %v6358_v41 = vld [vmem:[#allocation11 + $0x31c] ss:$28 sps:$4 sm:$0xff]   ;;  %v6353_v42 = vld [vmem:[#allocation11 + $0x310] ss:$28 sps:$4 sm:$0xff]  }
 0x421   :  { %v2574_v46 = vmul.bf16 1084244128, %v2570_v43  ;;  %vm2572_vm6 = vcmp.lt.bf16.partialorder %v2570_v43, 0  ;;  %v6361_v44 = vld [vmem:[#allocation11 + $0x34c] ss:$28 sps:$4 sm:$0xff]  }
 0x422   :  { %v2575_v47 = vmul.bf16 1084244128, %v2571_v45  ;;  %vm2573_vm7 = vcmp.lt.bf16.partialorder %v2571_v45, 0 }
 0x423   :  { %v2576_v53 = vsel %vm2572_vm6, %v2574_v46, %v2570_v43  ;;  %v6356_v43 = vld [vmem:[#allocation11 + $0x318] ss:$28 sps:$4 sm:$0xff]   ;;  %v6359_v46 = vld [vmem:[#allocation11 + $0x348] ss:$28 sps:$4 sm:$0xff]  }
 0x424   :  { %v2577_v50 = vsel %vm2573_vm7, %v2575_v47, %v2571_v45  ;;  %v6364_v45 = vld [vmem:[#allocation11 + $0x354] ss:$28 sps:$4 sm:$0xff]  }
 0x425   :  { %2994 = vmatprep.mubr.bf16.mxu1 %v2577_v50  ;;  %3037 = vmatprep.mubr.bf16.mxu0 %v2577_v50  ;;  %v6362_v47 = vld [vmem:[#allocation11 + $0x350] ss:$28 sps:$4 sm:$0xff]  }
 0x426   :  { %2995 = vmatmul.mubr.bf16.vlgmr.msra.gmra.mrb[8].mxu1 %v2576_v53  ;;  %3038 = vmatmul.mubr.bf16.vlgmr.msra.gmra.mrb[8].mxu0 %v2576_v53 }
 0x427   :  { %4473 = vmatpush1.bf16.msra.mxu1 %v6269_v48  ;;  %4559 = vmatpush1.bf16.msra.mxu0 %v6272_v49  ;;  %v6367_v48 = vld [vmem:[#allocation11 + $0x384] ss:$28 sps:$4 sm:$0xff]   ;;  %v6370_v49 = vld [vmem:[#allocation11 + $0x38c] ss:$28 sps:$4 sm:$0xff]  }
 0x428   :  { %4474 = vmatprep.subr.bf16.mxu1 %v6277_v51  ;;  %4560 = vmatprep.subr.bf16.mxu0 %v6280_v52 }
 0x42b   :  { %4475 = vmatpush1.bf16.msra.mxu1 %v6275_v54  ;;  %4561 = vmatpush1.bf16.msra.mxu0 %v6278_v55 }
 0x42c   :  { %4476 = vmatprep.subr.bf16.mxu1 %v6283_v56  ;;  %4562 = vmatprep.subr.bf16.mxu0 %v6286_v57 }
 0x42f   :  { %4477 = vmatpush1.bf16.msra.mxu1 %v6281_v58  ;;  %4563 = vmatpush1.bf16.msra.mxu0 %v6284_v59 }
 0x430   :  { %4478 = vmatprep.subr.bf16.mxu1 %v6289_v60  ;;  %4564 = vmatprep.subr.bf16.mxu0 %v6292_v61 }
 0x433   :  { %4479 = vmatpush1.bf16.msra.mxu1 %v6287_v62  ;;  %4565 = vmatpush1.bf16.msra.mxu0 %v6290_v63 }
 0x434   :  { %4480 = vmatprep.subr.bf16.mxu1 %v6295_v0  ;;  %4566 = vmatprep.subr.bf16.mxu0 %v6298_v1  ;;  %v6365_v1 = vld [vmem:[#allocation11 + $0x380] ss:$28 sps:$4 sm:$0xff]  }
 0x437   :  { %4481 = vmatpush1.bf16.msra.mxu1 %v6293_v2  ;;  %4567 = vmatpush1.bf16.msra.mxu0 %v6296_v3  ;;  %v6368_v2 = vld [vmem:[#allocation11 + $0x388] ss:$28 sps:$4 sm:$0xff]  }
 0x438   :  { %4482 = vmatprep.subr.bf16.mxu1 %v6301_v4  ;;  %4568 = vmatprep.subr.bf16.mxu0 %v6304_v5  ;;  %v6373_v5 = vld [vmem:[#allocation11 + $0x3bc] ss:$28 sps:$4 sm:$0xff]  }
 0x43b   :  { %4483 = vmatpush1.bf16.msra.mxu1 %v6299_v6  ;;  %4569 = vmatpush1.bf16.msra.mxu0 %v6302_v7  ;;  %v6376_v6 = vld [vmem:[#allocation11 + $0x3c4] ss:$28 sps:$4 sm:$0xff]  }
 0x43c   :  { %4484 = vmatprep.subr.bf16.mxu1 %v6307_v8  ;;  %4570 = vmatprep.subr.bf16.mxu0 %v6310_v9  ;;  %v6371_v8 = vld [vmem:[#allocation11 + $0x3b8] ss:$28 sps:$4 sm:$0xff]   ;;  %v6374_v9 = vld [vmem:[#allocation11 + $0x3c0] ss:$28 sps:$4 sm:$0xff]  }
 0x43f   :  { %4485 = vmatpush1.bf16.msra.mxu1 %v6305_v10  ;;  %4571 = vmatpush1.bf16.msra.mxu0 %v6308_v11  ;;  %v6379_v10 = vld [vmem:[#allocation11 + $0x3f4] ss:$28 sps:$4 sm:$0xff]   ;;  %v6382_v11 = vld [vmem:[#allocation11 + $0x3fc] ss:$28 sps:$4 sm:$0xff]  }
 0x440   :  { %4486 = vmatprep.subr.bf16.mxu1 %v6313_v12  ;;  %4572 = vmatprep.subr.bf16.mxu0 %v6316_v13  ;;  %v6377_v12 = vld [vmem:[#allocation11 + $0x3f0] ss:$28 sps:$4 sm:$0xff]   ;;  %v6380_v13 = vld [vmem:[#allocation11 + $0x3f8] ss:$28 sps:$4 sm:$0xff]  }
 0x443   :  { %4487 = vmatpush1.bf16.msra.mxu1 %v6311_v14  ;;  %4573 = vmatpush1.bf16.msra.mxu0 %v6314_v15  ;;  %v6385_v14 = vld [vmem:[#allocation11 + $0x42c] ss:$28 sps:$4 sm:$0xff]   ;;  %v6388_v15 = vld [vmem:[#allocation11 + $0x434] ss:$28 sps:$4 sm:$0xff]  }
 0x444   :  { %4488 = vmatprep.subr.bf16.mxu1 %v6319_v16  ;;  %4574 = vmatprep.subr.bf16.mxu0 %v6322_v17  ;;  %v6383_v16 = vld [vmem:[#allocation11 + $0x428] ss:$28 sps:$4 sm:$0xff]   ;;  %v6386_v17 = vld [vmem:[#allocation11 + $0x430] ss:$28 sps:$4 sm:$0xff]  }
 0x447   :  { %4489 = vmatpush1.bf16.msra.mxu1 %v6317_v18  ;;  %4575 = vmatpush1.bf16.msra.mxu0 %v6320_v19  ;;  %v6391_v18 = vld [vmem:[#allocation11 + $0x464] ss:$28 sps:$4 sm:$0xff]   ;;  %v6394_v19 = vld [vmem:[#allocation11 + $0x46c] ss:$28 sps:$4 sm:$0xff]  }
 0x448   :  { %4490 = vmatprep.subr.bf16.mxu1 %v6325_v20  ;;  %4576 = vmatprep.subr.bf16.mxu0 %v6328_v21  ;;  %v6389_v20 = vld [vmem:[#allocation11 + $0x460] ss:$28 sps:$4 sm:$0xff]   ;;  %v6392_v21 = vld [vmem:[#allocation11 + $0x468] ss:$28 sps:$4 sm:$0xff]  }
 0x44b   :  { %4491 = vmatpush1.bf16.msra.mxu1 %v6323_v22  ;;  %4577 = vmatpush1.bf16.msra.mxu0 %v6326_v23  ;;  %v6397_v22 = vld [vmem:[#allocation11 + $0x49c] ss:$28 sps:$4 sm:$0xff]   ;;  %v6400_v23 = vld [vmem:[#allocation11 + $0x4a4] ss:$28 sps:$4 sm:$0xff]  }
 0x44c   :  { %4492 = vmatprep.subr.bf16.mxu1 %v6331_v24  ;;  %4578 = vmatprep.subr.bf16.mxu0 %v6334_v25  ;;  %v6395_v24 = vld [vmem:[#allocation11 + $0x498] ss:$28 sps:$4 sm:$0xff]   ;;  %v6398_v25 = vld [vmem:[#allocation11 + $0x4a0] ss:$28 sps:$4 sm:$0xff]  }
 0x44f   :  { %4493 = vmatpush1.bf16.msra.mxu1 %v6329_v26  ;;  %4579 = vmatpush1.bf16.msra.mxu0 %v6332_v27  ;;  %v6403_v26 = vld [vmem:[#allocation11 + $0x4d4] ss:$28 sps:$4 sm:$0xff]   ;;  %v6406_v27 = vld [vmem:[#allocation11 + $0x4dc] ss:$28 sps:$4 sm:$0xff]  }
 0x450   :  { %4494 = vmatprep.subr.bf16.mxu1 %v6337_v28  ;;  %4580 = vmatprep.subr.bf16.mxu0 %v6340_v29  ;;  %v6401_v28 = vld [vmem:[#allocation11 + $0x4d0] ss:$28 sps:$4 sm:$0xff]   ;;  %v6404_v29 = vld [vmem:[#allocation11 + $0x4d8] ss:$28 sps:$4 sm:$0xff]  }
 0x453   :  { %4495 = vmatpush1.bf16.msra.mxu1 %v6335_v30  ;;  %4581 = vmatpush1.bf16.msra.mxu0 %v6338_v31  ;;  %v6409_v30 = vld [vmem:[#allocation11 + $0x50c] ss:$28 sps:$4 sm:$0xff]   ;;  %v6412_v31 = vld [vmem:[#allocation11 + $0x514] ss:$28 sps:$4 sm:$0xff]  }
 0x454   :  { %4496 = vmatprep.subr.bf16.mxu1 %v6343_v32  ;;  %4582 = vmatprep.subr.bf16.mxu0 %v6346_v33  ;;  %v6407_v32 = vld [vmem:[#allocation11 + $0x508] ss:$28 sps:$4 sm:$0xff]   ;;  %v6410_v33 = vld [vmem:[#allocation11 + $0x510] ss:$28 sps:$4 sm:$0xff]  }
 0x457   :  { %4497 = vmatpush1.bf16.msra.mxu1 %v6341_v34  ;;  %4583 = vmatpush1.bf16.msra.mxu0 %v6344_v35  ;;  %v6415_v34 = vld [vmem:[#allocation11 + $0x544] ss:$28 sps:$4 sm:$0xff]   ;;  %v6418_v35 = vld [vmem:[#allocation11 + $0x54c] ss:$28 sps:$4 sm:$0xff]  }
 0x458   :  { %4498 = vmatprep.subr.bf16.mxu1 %v6349_v36  ;;  %4584 = vmatprep.subr.bf16.mxu0 %v6352_v37  ;;  %v6413_v36 = vld [vmem:[#allocation11 + $0x540] ss:$28 sps:$4 sm:$0xff]   ;;  %v6416_v37 = vld [vmem:[#allocation11 + $0x548] ss:$28 sps:$4 sm:$0xff]  }
 0x45b   :  { %4499 = vmatpush1.bf16.msra.mxu1 %v6347_v38  ;;  %4585 = vmatpush1.bf16.msra.mxu0 %v6350_v39  ;;  %v6421_v38 = vld [vmem:[#allocation11 + $0x57c] ss:$28 sps:$4 sm:$0xff]   ;;  %v6424_v39 = vld [vmem:[#allocation11 + $0x584] ss:$28 sps:$4 sm:$0xff]  }
 0x45c   :  { %4500 = vmatprep.subr.bf16.mxu1 %v6355_v40  ;;  %4586 = vmatprep.subr.bf16.mxu0 %v6358_v41  ;;  %v6419_v40 = vld [vmem:[#allocation11 + $0x578] ss:$28 sps:$4 sm:$0xff]   ;;  %v6422_v41 = vld [vmem:[#allocation11 + $0x580] ss:$28 sps:$4 sm:$0xff]  }
 0x45f   :  { %4501 = vmatpush1.bf16.msra.mxu1 %v6353_v42  ;;  %4587 = vmatpush1.bf16.msra.mxu0 %v6356_v43  ;;  %v6427_v42 = vld [vmem:[#allocation11 + $0x5b4] ss:$28 sps:$4 sm:$0xff]   ;;  %v6430_v43 = vld [vmem:[#allocation11 + $0x5bc] ss:$28 sps:$4 sm:$0xff]  }
 0x460   :  { %4502 = vmatprep.subr.bf16.mxu1 %v6361_v44  ;;  %4588 = vmatprep.subr.bf16.mxu0 %v6364_v45  ;;  %v6425_v44 = vld [vmem:[#allocation11 + $0x5b0] ss:$28 sps:$4 sm:$0xff]   ;;  %v6428_v45 = vld [vmem:[#allocation11 + $0x5b8] ss:$28 sps:$4 sm:$0xff]  }
 0x463   :  { %4503 = vmatpush1.bf16.msra.mxu1 %v6359_v46  ;;  %4589 = vmatpush1.bf16.msra.mxu0 %v6362_v47  ;;  %v6433_v46 = vld [vmem:[#allocation11 + $0x5ec] ss:$28 sps:$4 sm:$0xff]   ;;  %v6436_v47 = vld [vmem:[#allocation11 + $0x5f4] ss:$28 sps:$4 sm:$0xff]  }
 0x464   :  { %4515 = vmatprep.subr.bf16.mxu1 %v6367_v48  ;;  %4601 = vmatprep.subr.bf16.mxu0 %v6370_v49  ;;  %v6431_v48 = vld [vmem:[#allocation11 + $0x5e8] ss:$28 sps:$4 sm:$0xff]   ;;  %v6434_v49 = vld [vmem:[#allocation11 + $0x5f0] ss:$28 sps:$4 sm:$0xff]  }
 0x4f9   :  { %v2996_v50 = vpop.f32.mrb[8].mxu1  ;;  %v3039_v51 = vpop.f32.mrb[8].mxu0 }
 0x4fa   :  { %v2998_v52 = vpop.f32.mrb[9].mxu1  ;;  %v3041_v53 = vpop.f32.mrb[9].mxu0 }
 0x4fb   :  { %v3000_v54 = vpop.f32.mrb[10].mxu1  ;;  %v3043_v55 = vpop.f32.mrb[10].mxu0 }
 0x4fc   :  { %v3048_v56 = vpack.c.bf16 %v3000_v54, %v2996_v50  ;;  %v6953_v57 = vpack.c.bf16 %v3043_v55, %v3039_v51  ;;  %v3002_v58 = vpop.f32.mrb[11].mxu1  ;;  %v3045_v59 = vpop.f32.mrb[11].mxu0  ;;  %v6439_v50 = vld [vmem:[#allocation11 + $0x624] ss:$28 sps:$4 sm:$0xff]   ;;  %v6442_v51 = vld [vmem:[#allocation11 + $0x62c] ss:$28 sps:$4 sm:$0xff]  }
 0x4fd   :  { %v3049_v60 = vpack.c.bf16 %v3002_v58, %v2998_v52  ;;  %v3051_v61 = vpack.c.bf16 %v3045_v59, %v3041_v53  ;;  %v6437_v52 = vld [vmem:[#allocation11 + $0x620] ss:$28 sps:$4 sm:$0xff]   ;;  %v6440_v53 = vld [vmem:[#allocation11 + $0x628] ss:$28 sps:$4 sm:$0xff]   ;;  %v6451_v59 = vld [vmem:[#allocation11 + $0x694] ss:$28 sps:$4 sm:$0xff]  }
 0x4fe   :  { %v3056_v62 = vmul.bf16 1084244128, %v3048_v56  ;;  %vm3052_vm8 = vcmp.lt.bf16.partialorder %v3048_v56, 0  ;;  %v6445_v54 = vld [vmem:[#allocation11 + $0x65c] ss:$28 sps:$4 sm:$0xff]   ;;  %vm3054_vm11 = vcmp.lt.bf16.partialorder %v6953_v57, 0 }
 0x4ff   :  { %vm3053_vm9 = vcmp.lt.bf16.partialorder %v3049_v60, 0  ;;  %v3057_v63 = vmul.bf16 1084244128, %v3049_v60  ;;  %v3059_v0 = vmul.bf16 1084244128, %v3051_v61  ;;  %vm3055_vm10 = vcmp.lt.bf16.partialorder %v3051_v61, 0 }
 0x500   :  { %v6959_v4 = vsel %vm3052_vm8, %v3056_v62, %v3048_v56  ;;  %v6448_v55 = vld [vmem:[#allocation11 + $0x664] ss:$28 sps:$4 sm:$0xff]   ;;  %v6443_v56 = vld [vmem:[#allocation11 + $0x658] ss:$28 sps:$4 sm:$0xff]  }
 0x501   :  { %v6955_v3 = vsel %vm3053_vm9, %v3057_v63, %v3049_v60  ;;  %v6963_v7 = vsel %vm3055_vm10, %v3059_v0, %v3051_v61  ;;  %v6446_v58 = vld [vmem:[#allocation11 + $0x660] ss:$28 sps:$4 sm:$0xff]   ;;  %v6449_v61 = vld [vmem:[#allocation11 + $0x690] ss:$28 sps:$4 sm:$0xff]   ;;  %v6452_v62 = vld [vmem:[#allocation11 + $0x698] ss:$28 sps:$4 sm:$0xff]  }
 0x502   :  { %4504 = vmatprep.mubr.bf16.mxu1 %v6955_v3  ;;  %4590 = vmatprep.mubr.bf16.mxu0 %v6955_v3  ;;  %v6454_v60 = vld [vmem:[#allocation11 + $0x69c] ss:$28 sps:$4 sm:$0xff]   ;;  %v6457_v63 = vld [vmem:[#allocation11 + $0x6cc] ss:$28 sps:$4 sm:$0xff]   ;;  %v6460_v0 = vld [vmem:[#allocation11 + $0x6d4] ss:$28 sps:$4 sm:$0xff]  }
 0x503   :  { %4505 = vmatmul.mubr.bf16.vlgmr.msra.gmra.mrb[12].mxu1 %v6959_v4  ;;  %4591 = vmatmul.mubr.bf16.vlgmr.msra.gmra.mrb[12].mxu0 %v6959_v4 }
 0x504   :  { %4516 = vmatpush1.bf16.msra.mxu1 %v6365_v1  ;;  %4602 = vmatpush1.bf16.msra.mxu0 %v6368_v2  ;;  %v6455_v1 = vld [vmem:[#allocation11 + $0x6c8] ss:$28 sps:$4 sm:$0xff]   ;;  %v6458_v2 = vld [vmem:[#allocation11 + $0x6d0] ss:$28 sps:$4 sm:$0xff]  }
 0x505   :  { %4547 = vmatprep.mubr.bf16.mxu1 %v6963_v7  ;;  %4633 = vmatprep.mubr.bf16.mxu0 %v6963_v7 }
 0x506   :  { %4517 = vmatprep.subr.bf16.mxu1 %v6373_v5  ;;  %4603 = vmatprep.subr.bf16.mxu0 %v6376_v6  ;;  %v6463_v5 = vld [vmem:[#allocation11 + $0x14] ss:$28 sps:$4 sm:$0xff]  }
 0x507   :  { %v6464_v6 = vld [vmem:[#allocation11 + $0x1d8] ss:$28 sps:$4 sm:$0xff]  }
 0x508   :  { %4518 = vmatpush1.bf16.msra.mxu1 %v6371_v8  ;;  %4604 = vmatpush1.bf16.msra.mxu0 %v6374_v9  ;;  %v3058_v8 = vmul.bf16 1084244128, %v6953_v57  ;;  %v6461_v9 = vld [vmem:[#allocation11 + $0x10] ss:$28 sps:$4 sm:$0xff]  }
 0x509   :  { %4519 = vmatprep.subr.bf16.mxu1 %v6379_v10  ;;  %4605 = vmatprep.subr.bf16.mxu0 %v6382_v11  ;;  %v6465_v10 = vld [vmem:[#allocation11 + $0x18] ss:$28 sps:$4 sm:$0xff]  }
 0x50a   :  { %v6970_v11 = vsel %vm3054_vm11, %v3058_v8, %v6953_v57  ;;  %v6471_v57 = vld [vmem:[#allocation11 + $0x80] ss:$28 sps:$4 sm:$0xff]   ;;  %v6536_v8 = vld [vmem:[#allocation11 + $0x358] ss:$28 sps:$4 sm:$0xff]  }
 0x50c   :  { %4520 = vmatpush1.bf16.msra.mxu1 %v6377_v12  ;;  %4606 = vmatpush1.bf16.msra.mxu0 %v6380_v13  ;;  %v6468_v12 = vld [vmem:[#allocation11 + $0x4c] ss:$28 sps:$4 sm:$0xff]  }
 0x50d   :  { %4521 = vmatprep.subr.bf16.mxu1 %v6385_v14  ;;  %4607 = vmatprep.subr.bf16.mxu0 %v6388_v15  ;;  %v6469_v13 = vld [vmem:[#allocation11 + $0x210] ss:$28 sps:$4 sm:$0xff]   ;;  %v6466_v14 = vld [vmem:[#allocation11 + $0x48] ss:$28 sps:$4 sm:$0xff]  }
 0x50e   :  { %v6470_v15 = vld [vmem:[#allocation11 + $0x50] ss:$28 sps:$4 sm:$0xff]  }
 0x510   :  { %4522 = vmatpush1.bf16.msra.mxu1 %v6383_v16  ;;  %4608 = vmatpush1.bf16.msra.mxu0 %v6386_v17  ;;  %v6473_v16 = vld [vmem:[#allocation11 + $0x84] ss:$28 sps:$4 sm:$0xff]  }
 0x511   :  { %4523 = vmatprep.subr.bf16.mxu1 %v6391_v18  ;;  %4609 = vmatprep.subr.bf16.mxu0 %v6394_v19  ;;  %v6474_v17 = vld [vmem:[#allocation11 + $0x248] ss:$28 sps:$4 sm:$0xff]   ;;  %v6478_v19 = vld [vmem:[#allocation11 + $0xbc] ss:$28 sps:$4 sm:$0xff]  }
 0x512   :  { %v6475_v18 = vld [vmem:[#allocation11 + $0x88] ss:$28 sps:$4 sm:$0xff]  }
 0x514   :  { %4524 = vmatpush1.bf16.msra.mxu1 %v6389_v20  ;;  %4610 = vmatpush1.bf16.msra.mxu0 %v6392_v21  ;;  %v6479_v20 = vld [vmem:[#allocation11 + $0x280] ss:$28 sps:$4 sm:$0xff]   ;;  %v6476_v21 = vld [vmem:[#allocation11 + $0xb8] ss:$28 sps:$4 sm:$0xff]  }
 0x515   :  { %4525 = vmatprep.subr.bf16.mxu1 %v6397_v22  ;;  %4611 = vmatprep.subr.bf16.mxu0 %v6400_v23  ;;  %v6480_v22 = vld [vmem:[#allocation11 + $0xc0] ss:$28 sps:$4 sm:$0xff]   ;;  %v6483_v23 = vld [vmem:[#allocation11 + $0xf4] ss:$28 sps:$4 sm:$0xff]  }
 0x518   :  { %4526 = vmatpush1.bf16.msra.mxu1 %v6395_v24  ;;  %4612 = vmatpush1.bf16.msra.mxu0 %v6398_v25  ;;  %v6481_v24 = vld [vmem:[#allocation11 + $0xf0] ss:$28 sps:$4 sm:$0xff]   ;;  %v6485_v25 = vld [vmem:[#allocation11 + $0xf8] ss:$28 sps:$4 sm:$0xff]  }
 0x519   :  { %4527 = vmatprep.subr.bf16.mxu1 %v6403_v26  ;;  %4613 = vmatprep.subr.bf16.mxu0 %v6406_v27  ;;  %v6488_v26 = vld [vmem:[#allocation11 + $0x12c] ss:$28 sps:$4 sm:$0xff]  }
 0x51a   :  { %v6489_v27 = vld [vmem:[#allocation11 + $0x2f0] ss:$28 sps:$4 sm:$0xff]  }
 0x51c   :  { %4528 = vmatpush1.bf16.msra.mxu1 %v6401_v28  ;;  %4614 = vmatpush1.bf16.msra.mxu0 %v6404_v29  ;;  %v6486_v28 = vld [vmem:[#allocation11 + $0x128] ss:$28 sps:$4 sm:$0xff]   ;;  %v6490_v29 = vld [vmem:[#allocation11 + $0x130] ss:$28 sps:$4 sm:$0xff]  }
 0x51d   :  { %4529 = vmatprep.subr.bf16.mxu1 %v6409_v30  ;;  %4615 = vmatprep.subr.bf16.mxu0 %v6412_v31  ;;  %v6493_v30 = vld [vmem:[#allocation11 + $0x164] ss:$28 sps:$4 sm:$0xff]  }
 0x51e   :  { %v6494_v31 = vld [vmem:[#allocation11 + $0x328] ss:$28 sps:$4 sm:$0xff]  }
 0x520   :  { %4530 = vmatpush1.bf16.msra.mxu1 %v6407_v32  ;;  %4616 = vmatpush1.bf16.msra.mxu0 %v6410_v33  ;;  %v6491_v32 = vld [vmem:[#allocation11 + $0x160] ss:$28 sps:$4 sm:$0xff]   ;;  %v6495_v33 = vld [vmem:[#allocation11 + $0x168] ss:$28 sps:$4 sm:$0xff]  }
 0x521   :  { %4531 = vmatprep.subr.bf16.mxu1 %v6415_v34  ;;  %4617 = vmatprep.subr.bf16.mxu0 %v6418_v35  ;;  %v6498_v34 = vld [vmem:[#allocation11 + $0x19c] ss:$28 sps:$4 sm:$0xff]  }
 0x522   :  { %v6499_v35 = vld [vmem:[#allocation11 + $0x360] ss:$28 sps:$4 sm:$0xff]  }
 0x524   :  { %4532 = vmatpush1.bf16.msra.mxu1 %v6413_v36  ;;  %4618 = vmatpush1.bf16.msra.mxu0 %v6416_v37  ;;  %v6496_v36 = vld [vmem:[#allocation11 + $0x198] ss:$28 sps:$4 sm:$0xff]   ;;  %v6500_v37 = vld [vmem:[#allocation11 + $0x1a0] ss:$28 sps:$4 sm:$0xff]  }
 0x525   :  { %4533 = vmatprep.subr.bf16.mxu1 %v6421_v38  ;;  %4619 = vmatprep.subr.bf16.mxu0 %v6424_v39  ;;  %v6503_v38 = vld [vmem:[#allocation11 + $0x1d4] ss:$28 sps:$4 sm:$0xff]  }
 0x526   :  { %v6504_v39 = vld [vmem:[#allocation11 + $0x558] ss:$28 sps:$4 sm:$0xff]  }
 0x528   :  { %4534 = vmatpush1.bf16.msra.mxu1 %v6419_v40  ;;  %4620 = vmatpush1.bf16.msra.mxu0 %v6422_v41  ;;  %v6501_v40 = vld [vmem:[#allocation11 + $0x1d0] ss:$28 sps:$4 sm:$0xff]   ;;  %v6505_v41 = vld [vmem:[#allocation11 + $0x398] ss:$28 sps:$4 sm:$0xff]  }
 0x529   :  { %4535 = vmatprep.subr.bf16.mxu1 %v6427_v42  ;;  %4621 = vmatprep.subr.bf16.mxu0 %v6430_v43  ;;  %v6508_v42 = vld [vmem:[#allocation11 + $0x20c] ss:$28 sps:$4 sm:$0xff]  }
 0x52a   :  { %v6509_v43 = vld [vmem:[#allocation11 + $0x590] ss:$28 sps:$4 sm:$0xff]  }
 0x52c   :  { %4536 = vmatpush1.bf16.msra.mxu1 %v6425_v44  ;;  %4622 = vmatpush1.bf16.msra.mxu0 %v6428_v45  ;;  %v6506_v44 = vld [vmem:[#allocation11 + $0x208] ss:$28 sps:$4 sm:$0xff]   ;;  %v6510_v45 = vld [vmem:[#allocation11 + $0x3d0] ss:$28 sps:$4 sm:$0xff]  }
 0x52d   :  { %4537 = vmatprep.subr.bf16.mxu1 %v6433_v46  ;;  %4623 = vmatprep.subr.bf16.mxu0 %v6436_v47  ;;  %v6513_v46 = vld [vmem:[#allocation11 + $0x244] ss:$28 sps:$4 sm:$0xff]  }
 0x52e   :  { %v6514_v47 = vld [vmem:[#allocation11 + $0x5c8] ss:$28 sps:$4 sm:$0xff]  }
 0x530   :  { %4538 = vmatpush1.bf16.msra.mxu1 %v6431_v48  ;;  %4624 = vmatpush1.bf16.msra.mxu0 %v6434_v49  ;;  %v6511_v48 = vld [vmem:[#allocation11 + $0x240] ss:$28 sps:$4 sm:$0xff]   ;;  %v6515_v49 = vld [vmem:[#allocation11 + $0x408] ss:$28 sps:$4 sm:$0xff]  }
 0x531   :  { %4539 = vmatprep.subr.bf16.mxu1 %v6439_v50  ;;  %4625 = vmatprep.subr.bf16.mxu0 %v6442_v51  ;;  %v6518_v50 = vld [vmem:[#allocation11 + $0x27c] ss:$28 sps:$4 sm:$0xff]  }
 0x532   :  { %v6519_v51 = vld [vmem:[#allocation11 + $0x600] ss:$28 sps:$4 sm:$0xff]  }
 0x534   :  { %4540 = vmatpush1.bf16.msra.mxu1 %v6437_v52  ;;  %4626 = vmatpush1.bf16.msra.mxu0 %v6440_v53  ;;  %v6516_v52 = vld [vmem:[#allocation11 + $0x278] ss:$28 sps:$4 sm:$0xff]   ;;  %v6520_v53 = vld [vmem:[#allocation11 + $0x440] ss:$28 sps:$4 sm:$0xff]  }
 0x535   :  { %4541 = vmatprep.subr.bf16.mxu1 %v6445_v54  ;;  %4627 = vmatprep.subr.bf16.mxu0 %v6448_v55  ;;  %v6523_v54 = vld [vmem:[#allocation11 + $0x2b4] ss:$28 sps:$4 sm:$0xff]  }
 0x536   :  { %v6524_v55 = vld [vmem:[#allocation11 + $0x638] ss:$28 sps:$4 sm:$0xff]  }
 0x538   :  { %4542 = vmatpush1.bf16.msra.mxu1 %v6443_v56  ;;  %4628 = vmatpush1.bf16.msra.mxu0 %v6446_v58  ;;  %v6521_v56 = vld [vmem:[#allocation11 + $0x2b0] ss:$28 sps:$4 sm:$0xff]   ;;  %v6525_v58 = vld [vmem:[#allocation11 + $0x478] ss:$28 sps:$4 sm:$0xff]  }
 0x539   :  { %4543 = vmatprep.subr.bf16.mxu1 %v6451_v59  ;;  %4629 = vmatprep.subr.bf16.mxu0 %v6454_v60  ;;  %v6528_v59 = vld [vmem:[#allocation11 + $0x2ec] ss:$28 sps:$4 sm:$0xff]  }
 0x53a   :  { %v6529_v60 = vld [vmem:[#allocation11 + $0x670] ss:$28 sps:$4 sm:$0xff]  }
 0x53c   :  { %4544 = vmatpush1.bf16.msra.mxu1 %v6449_v61  ;;  %4630 = vmatpush1.bf16.msra.mxu0 %v6452_v62  ;;  %v6526_v61 = vld [vmem:[#allocation11 + $0x2e8] ss:$28 sps:$4 sm:$0xff]   ;;  %v6530_v62 = vld [vmem:[#allocation11 + $0x4b0] ss:$28 sps:$4 sm:$0xff]  }
 0x53d   :  { %4545 = vmatprep.subr.bf16.mxu1 %v6457_v63  ;;  %4631 = vmatprep.subr.bf16.mxu0 %v6460_v0  ;;  %v6533_v63 = vld [vmem:[#allocation11 + $0x324] ss:$28 sps:$4 sm:$0xff]  }
 0x53e   :  { %v6534_v0 = vld [vmem:[#allocation11 + $0x6a8] ss:$28 sps:$4 sm:$0xff]  }
 0x540   :  { %4546 = vmatpush1.bf16.msra.mxu1 %v6455_v1  ;;  %4632 = vmatpush1.bf16.msra.mxu0 %v6458_v2  ;;  %v6531_v1 = vld [vmem:[#allocation11 + $0x320] ss:$28 sps:$4 sm:$0xff]   ;;  %v6535_v2 = vld [vmem:[#allocation11 + $0x4e8] ss:$28 sps:$4 sm:$0xff]  }
 0x541   :  { %4644 = vmatprep.subr.bf16.mxu1 %v6463_v5  ;;  %5585 = vmatprep.subr.bf16.mxu0 %v6464_v6  ;;  %v6538_v5 = vld [vmem:[#allocation11 + $0x35c] ss:$28 sps:$4 sm:$0xff]  }
 0x542   :  { %v6539_v6 = vld [vmem:[#allocation11 + $0x6e0] ss:$28 sps:$4 sm:$0xff]  }
 0x543   :  { %4548 = vmatmul.mubr.bf16.vlgmr.msra.gmra.mrb[12].mxu1 %v6970_v11  ;;  %4634 = vmatmul.mubr.bf16.vlgmr.msra.gmra.mrb[12].mxu0 %v6970_v11 }
 0x544   :  { %4645 = vmatpush1.bf16.msra.mxu1 %v6461_v9  ;;  %4676 = vmatprep.mubr.bf16.mxu1 %v6955_v3  ;;  %v6540_v9 = vld [vmem:[#allocation11 + $0x520] ss:$28 sps:$4 sm:$0xff]  }
 0x545   :  { %5586 = vmatpush3.bf16.msra.mxu0 %v6465_v10  ;;  %4762 = vmatprep.mubr.bf16.mxu0 %v6955_v3  ;;  %v6484_v3 = vld [vmem:[#allocation11 + $0x2b8] ss:$28 sps:$4 sm:$0xff]  }
 0x546   :  { %4646 = vmatprep.subr.bf16.mxu1 %v6468_v12  ;;  %5587 = vmatprep.subr.bf16.mxu0 %v6469_v13  ;;  %v6543_v10 = vld [vmem:[#allocation11 + $0x394] ss:$28 sps:$4 sm:$0xff]   ;;  %v6546_v13 = vld [vmem:[#allocation11 + $0x3cc] ss:$28 sps:$4 sm:$0xff]  }
 0x547   :  { %v6541_v12 = vld [vmem:[#allocation11 + $0x390] ss:$28 sps:$4 sm:$0xff]  }
 0x548   :  { %4647 = vmatpush1.bf16.msra.mxu1 %v6466_v14  ;;  %v6544_v14 = vld [vmem:[#allocation11 + $0x3c8] ss:$28 sps:$4 sm:$0xff]  }
 0x549   :  { %5588 = vmatpush3.bf16.msra.mxu0 %v6470_v15  ;;  %4648 = vmatprep.subr.bf16.mxu1 %v6473_v16  ;;  %v6549_v15 = vld [vmem:[#allocation11 + $0x404] ss:$28 sps:$4 sm:$0xff]  }
 0x54a   :  { %5589 = vmatprep.subr.bf16.mxu0 %v6474_v17  ;;  %v6547_v16 = vld [vmem:[#allocation11 + $0x400] ss:$28 sps:$4 sm:$0xff]  }
 0x54b   :  { %v6552_v17 = vld [vmem:[#allocation11 + $0x43c] ss:$28 sps:$4 sm:$0xff]  }
 0x54c   :  { %4649 = vmatpush1.bf16.msra.mxu1 %v6471_v57  ;;  %v6550_v57 = vld [vmem:[#allocation11 + $0x438] ss:$28 sps:$4 sm:$0xff]  }
 0x54d   :  { %5590 = vmatpush3.bf16.msra.mxu0 %v6475_v18  ;;  %4650 = vmatprep.subr.bf16.mxu1 %v6478_v19  ;;  %v6555_v18 = vld [vmem:[#allocation11 + $0x474] ss:$28 sps:$4 sm:$0xff]  }
 0x54e   :  { %5591 = vmatprep.subr.bf16.mxu0 %v6479_v20  ;;  %v6553_v19 = vld [vmem:[#allocation11 + $0x470] ss:$28 sps:$4 sm:$0xff]   ;;  %v6556_v20 = vld [vmem:[#allocation11 + $0x4a8] ss:$28 sps:$4 sm:$0xff]  }
 0x550   :  { %4651 = vmatpush1.bf16.msra.mxu1 %v6476_v21  ;;  %v6561_v21 = vld [vmem:[#allocation11 + $0x4e4] ss:$28 sps:$4 sm:$0xff]  }
 0x551   :  { %5592 = vmatpush3.bf16.msra.mxu0 %v6480_v22  ;;  %4652 = vmatprep.subr.bf16.mxu1 %v6483_v23  ;;  %v6564_v22 = vld [vmem:[#allocation11 + $0x51c] ss:$28 sps:$4 sm:$0xff]  }
 0x552   :  { %5593 = vmatprep.subr.bf16.mxu0 %v6484_v3  ;;  %v6562_v23 = vld [vmem:[#allocation11 + $0x518] ss:$28 sps:$4 sm:$0xff]  }
 0x553   :  { %v6567_v3 = vld [vmem:[#allocation11 + $0x554] ss:$28 sps:$4 sm:$0xff]  }
 0x554   :  { %4653 = vmatpush1.bf16.msra.mxu1 %v6481_v24  ;;  %v6565_v24 = vld [vmem:[#allocation11 + $0x550] ss:$28 sps:$4 sm:$0xff]  }
 0x555   :  { %5594 = vmatpush3.bf16.msra.mxu0 %v6485_v25  ;;  %4654 = vmatprep.subr.bf16.mxu1 %v6488_v26  ;;  %v6570_v25 = vld [vmem:[#allocation11 + $0x58c] ss:$28 sps:$4 sm:$0xff]  }
 0x556   :  { %5595 = vmatprep.subr.bf16.mxu0 %v6489_v27  ;;  %v6568_v26 = vld [vmem:[#allocation11 + $0x588] ss:$28 sps:$4 sm:$0xff]  }
 0x557   :  { %v6573_v27 = vld [vmem:[#allocation11 + $0x5c4] ss:$28 sps:$4 sm:$0xff]  }
 0x558   :  { %4655 = vmatpush1.bf16.msra.mxu1 %v6486_v28  ;;  %v6571_v28 = vld [vmem:[#allocation11 + $0x5c0] ss:$28 sps:$4 sm:$0xff]  }
 0x559   :  { %5596 = vmatpush3.bf16.msra.mxu0 %v6490_v29  ;;  %4656 = vmatprep.subr.bf16.mxu1 %v6493_v30  ;;  %v6576_v29 = vld [vmem:[#allocation11 + $0x5fc] ss:$28 sps:$4 sm:$0xff]  }
 0x55a   :  { %5597 = vmatprep.subr.bf16.mxu0 %v6494_v31  ;;  %v6574_v30 = vld [vmem:[#allocation11 + $0x5f8] ss:$28 sps:$4 sm:$0xff]  }
 0x55b   :  { %v6579_v31 = vld [vmem:[#allocation11 + $0x634] ss:$28 sps:$4 sm:$0xff]  }
 0x55c   :  { %4657 = vmatpush1.bf16.msra.mxu1 %v6491_v32  ;;  %v6577_v32 = vld [vmem:[#allocation11 + $0x630] ss:$28 sps:$4 sm:$0xff]  }
 0x55d   :  { %5598 = vmatpush3.bf16.msra.mxu0 %v6495_v33  ;;  %4658 = vmatprep.subr.bf16.mxu1 %v6498_v34  ;;  %v6582_v33 = vld [vmem:[#allocation11 + $0x66c] ss:$28 sps:$4 sm:$0xff]  }
 0x55e   :  { %5599 = vmatprep.subr.bf16.mxu0 %v6499_v35  ;;  %v6580_v34 = vld [vmem:[#allocation11 + $0x668] ss:$28 sps:$4 sm:$0xff]  }
 0x55f   :  { %v6585_v35 = vld [vmem:[#allocation11 + $0x6a4] ss:$28 sps:$4 sm:$0xff]  }
 0x560   :  { %4659 = vmatpush1.bf16.msra.mxu1 %v6496_v36  ;;  %v6583_v36 = vld [vmem:[#allocation11 + $0x6a0] ss:$28 sps:$4 sm:$0xff]  }
 0x561   :  { %5600 = vmatpush3.bf16.msra.mxu0 %v6500_v37  ;;  %4660 = vmatprep.subr.bf16.mxu1 %v6503_v38  ;;  %v6588_v37 = vld [vmem:[#allocation11 + $0x6dc] ss:$28 sps:$4 sm:$0xff]  }
 0x562   :  { %5607 = vmatprep.subr.bf16.mxu0 %v6504_v39  ;;  %v6586_v38 = vld [vmem:[#allocation11 + $0x6d8] ss:$28 sps:$4 sm:$0xff]  }
 0x564   :  { %4763 = vmatmul.mubr.bf16.vlgmr.msra.gmra.mrb[16].mxu0 %v6959_v4  ;;  %4661 = vmatpush1.bf16.msra.mxu1 %v6501_v40 }
 0x565   :  { %5608 = vmatpush3.bf16.msra.mxu0 %v6505_v41  ;;  %4803 = vmatprep.mubr.bf16.mxu0 %v6963_v7 }
 0x566   :  { %4662 = vmatprep.subr.bf16.mxu1 %v6508_v42  ;;  %5609 = vmatprep.subr.bf16.mxu0 %v6509_v43 }
 0x568   :  { %4663 = vmatpush1.bf16.msra.mxu1 %v6506_v44 }
 0x569   :  { %5610 = vmatpush3.bf16.msra.mxu0 %v6510_v45  ;;  %4664 = vmatprep.subr.bf16.mxu1 %v6513_v46 }
 0x56a   :  { %5611 = vmatprep.subr.bf16.mxu0 %v6514_v47 }
 0x56c   :  { %4665 = vmatpush1.bf16.msra.mxu1 %v6511_v48 }
 0x56d   :  { %5612 = vmatpush3.bf16.msra.mxu0 %v6515_v49  ;;  %4666 = vmatprep.subr.bf16.mxu1 %v6518_v50 }
 0x56e   :  { %5613 = vmatprep.subr.bf16.mxu0 %v6519_v51 }
 0x570   :  { %4667 = vmatpush1.bf16.msra.mxu1 %v6516_v52 }
 0x571   :  { %5614 = vmatpush3.bf16.msra.mxu0 %v6520_v53  ;;  %4668 = vmatprep.subr.bf16.mxu1 %v6523_v54 }
 0x572   :  { %5615 = vmatprep.subr.bf16.mxu0 %v6524_v55 }
 0x574   :  { %4669 = vmatpush1.bf16.msra.mxu1 %v6521_v56 }
 0x575   :  { %5616 = vmatpush3.bf16.msra.mxu0 %v6525_v58  ;;  %4670 = vmatprep.subr.bf16.mxu1 %v6528_v59 }
 0x576   :  { %5617 = vmatprep.subr.bf16.mxu0 %v6529_v60 }
 0x578   :  { %4671 = vmatpush1.bf16.msra.mxu1 %v6526_v61 }
 0x579   :  { %5618 = vmatpush3.bf16.msra.mxu0 %v6530_v62  ;;  %4672 = vmatprep.subr.bf16.mxu1 %v6533_v63 }
 0x57a   :  { %5619 = vmatprep.subr.bf16.mxu0 %v6534_v0 }
 0x57c   :  { %4673 = vmatpush1.bf16.msra.mxu1 %v6531_v1 }
 0x57d   :  { %5620 = vmatpush3.bf16.msra.mxu0 %v6535_v2  ;;  %4674 = vmatprep.subr.bf16.mxu1 %v6538_v5 }
 0x57e   :  { %5621 = vmatprep.subr.bf16.mxu0 %v6539_v6 }
 0x580   :  { %4675 = vmatpush1.bf16.msra.mxu1 %v6536_v8 }
 0x581   :  { %5622 = vmatpush3.bf16.msra.mxu0 %v6540_v9  ;;  %4687 = vmatprep.subr.bf16.mxu1 %v6543_v10 }
 0x583   :  { %4677 = vmatmul.mubr.bf16.vlgmr.msra.gmra.mrb[16].mxu1 %v6959_v4  ;;  %v6558_v4 = vld [vmem:[#allocation11 + $0x4ac] ss:$28 sps:$4 sm:$0xff]  }
 0x584   :  { %4804 = vmatmul.mubr.bf16.vlgmr.msra.gmra.mrb[20].mxu0 %v6970_v11  ;;  %4688 = vmatpush1.bf16.msra.mxu1 %v6541_v12 }
 0x585   :  { %4719 = vmatprep.mubr.bf16.mxu1 %v6963_v7  ;;  %4689 = vmatprep.subr.bf16.mxu1 %v6546_v13  ;;  %v6559_v7 = vld [vmem:[#allocation11 + $0x4e0] ss:$28 sps:$4 sm:$0xff]  }
 0x588   :  { %4690 = vmatpush1.bf16.msra.mxu1 %v6544_v14 }
 0x589   :  { %4691 = vmatprep.subr.bf16.mxu1 %v6549_v15 }
 0x58c   :  { %4692 = vmatpush1.bf16.msra.mxu1 %v6547_v16 }
 0x58d   :  { %4693 = vmatprep.subr.bf16.mxu1 %v6552_v17 }
 0x590   :  { %4694 = vmatpush1.bf16.msra.mxu1 %v6550_v57 }
 0x591   :  { %4695 = vmatprep.subr.bf16.mxu1 %v6555_v18 }
 0x594   :  { %4696 = vmatpush1.bf16.msra.mxu1 %v6553_v19 }
 0x595   :  { %4697 = vmatprep.subr.bf16.mxu1 %v6558_v4 }
 0x598   :  { %4698 = vmatpush1.bf16.msra.mxu1 %v6556_v20 }
 0x599   :  { %4699 = vmatprep.subr.bf16.mxu1 %v6561_v21 }
 0x59c   :  { %4700 = vmatpush1.bf16.msra.mxu1 %v6559_v7 }
 0x59d   :  { %4701 = vmatprep.subr.bf16.mxu1 %v6564_v22 }
 0x5a0   :  { %4702 = vmatpush1.bf16.msra.mxu1 %v6562_v23 }
 0x5a1   :  { %4703 = vmatprep.subr.bf16.mxu1 %v6567_v3 }
 0x5a4   :  { %4704 = vmatpush1.bf16.msra.mxu1 %v6565_v24 }
 0x5a5   :  { %4705 = vmatprep.subr.bf16.mxu1 %v6570_v25 }
 0x5a8   :  { %4706 = vmatpush1.bf16.msra.mxu1 %v6568_v26 }
 0x5a9   :  { %4707 = vmatprep.subr.bf16.mxu1 %v6573_v27 }
 0x5ac   :  { %4708 = vmatpush1.bf16.msra.mxu1 %v6571_v28 }
 0x5ad   :  { %4709 = vmatprep.subr.bf16.mxu1 %v6576_v29 }
 0x5b0   :  { %4710 = vmatpush1.bf16.msra.mxu1 %v6574_v30 }
 0x5b1   :  { %4711 = vmatprep.subr.bf16.mxu1 %v6579_v31 }
 0x5b4   :  { %4712 = vmatpush1.bf16.msra.mxu1 %v6577_v32 }
 0x5b5   :  { %4713 = vmatprep.subr.bf16.mxu1 %v6582_v33 }
 0x5b8   :  { %4714 = vmatpush1.bf16.msra.mxu1 %v6580_v34 }
 0x5b9   :  { %4715 = vmatprep.subr.bf16.mxu1 %v6585_v35 }
 0x5bc   :  { %4716 = vmatpush1.bf16.msra.mxu1 %v6583_v36 }
 0x5bd   :  { %4717 = vmatprep.subr.bf16.mxu1 %v6588_v37 }
 0x5c0   :  { %4718 = vmatpush1.bf16.msra.mxu1 %v6586_v38 }
 0x5c3   :  { %4720 = vmatmul.mubr.bf16.vlgmr.msra.gmra.mrb[16].mxu1 %v6970_v11 }
 0x616   :  { %v4549_v39 = vpop.f32.mrb[12].mxu1  ;;  %v4635_v40 = vpop.f32.mrb[12].mxu0 }
 0x617   :  { %v4812_v41 = vsub.f32 0.0, %v4549_v39  ;;  %v4814_v42 = vsub.f32 0.0, %v4635_v40  ;;  %v4551_v43 = vpop.f32.mrb[13].mxu1  ;;  %v4637_v44 = vpop.f32.mrb[13].mxu0 }
 0x618   :  { %v4813_v45 = vsub.f32 0.0, %v4551_v43  ;;  %v4815_v46 = vsub.f32 0.0, %v4637_v44  ;;  %v4553_v47 = vpop.f32.mrb[14].mxu1  ;;  %v4639_v48 = vpop.f32.mrb[14].mxu0 }
 0x619   :  { %v4826_v49 = vmul.f32 1.442695, %v4812_v41  ;;  %v4830_v50 = vmul.f32 1.442695, %v4814_v42  ;;  %v4819_v51 = vsub.f32 0.0, %v4553_v47  ;;  %v4821_v52 = vsub.f32 0.0, %v4639_v48 }
 0x61a   :  { %v4828_v53 = vmul.f32 1.442695, %v4813_v45  ;;  %v4832_v54 = vmul.f32 1.442695, %v4815_v46  ;;  %v4555_v55 = vpop.f32.mrb[15].mxu1  ;;  %v4641_v56 = vpop.f32.mrb[15].mxu0 }
 0x61b   :  { %6589 = vpow2.f32 %v4826_v49  ;;  %v4840_v11 = vmul.f32 1.442695, %v4819_v51  ;;  %v4820_v58 = vsub.f32 0.0, %v4555_v55  ;;  %v4844_v59 = vmul.f32 1.442695, %v4821_v52 }
 0x61c   :  { %6591 = vpow2.f32 %v4830_v50  ;;  %v4822_v60 = vsub.f32 0.0, %v4641_v56 }
 0x61d   :  { %6593 = vpow2.f32 %v4828_v53  ;;  %v4842_v61 = vmul.f32 1.442695, %v4820_v58 }
 0x61e   :  { %6595 = vpow2.f32 %v4832_v54  ;;  %v4846_v62 = vmul.f32 1.442695, %v4822_v60 }
 0x61f   :  { %6597 = vpow2.f32 %v4840_v11 }
 0x620   :  { %6599 = vpow2.f32 %v4844_v59 }
 0x621   :  { %6601 = vpow2.f32 %v4842_v61 }
 0x622   :  { %6603 = vpow2.f32 %v4846_v62 }
 0x625   :  { %v6590_v63 = vpop.eup %6589 }
 0x626   :  { %v6592_v0 = vpop.eup %6591  ;;  %v4854_v1 = vadd.f32 1.0, %v6590_v63 }
 0x627   :  { %v6594_v2 = vpop.eup %6593  ;;  %v4856_v5 = vadd.f32 1.0, %v6592_v0 }
 0x628   :  { %v6596_v6 = vpop.eup %6595  ;;  %6605 = vrcp.f32 %v4854_v1  ;;  %v4855_v8 = vadd.f32 1.0, %v6594_v2 }
 0x629   :  { %v6598_v9 = vpop.eup %6597  ;;  %6607 = vrcp.f32 %v4856_v5  ;;  %v4857_v10 = vadd.f32 1.0, %v6596_v6 }
 0x62a   :  { %v6600_v12 = vpop.eup %6599  ;;  %6609 = vrcp.f32 %v4855_v8  ;;  %v4861_v13 = vadd.f32 1.0, %v6598_v9 }
 0x62b   :  { %v6602_v14 = vpop.eup %6601  ;;  %6611 = vrcp.f32 %v4857_v10  ;;  %v4863_v15 = vadd.f32 1.0, %v6600_v12 }
 0x62c   :  { %v6604_v16 = vpop.eup %6603  ;;  %6613 = vrcp.f32 %v4861_v13  ;;  %v4862_v17 = vadd.f32 1.0, %v6602_v14 }
 0x62d   :  { %6615 = vrcp.f32 %v4863_v15  ;;  %v4864_v57 = vadd.f32 1.0, %v6604_v16 }
 0x62e   :  { %6617 = vrcp.f32 %v4862_v17 }
 0x62f   :  { %6619 = vrcp.f32 %v4864_v57 }
 0x632   :  { %v6606_v18 = vpop.eup %6605 }
 0x633   :  { %v6608_v19 = vpop.eup %6607 }
 0x634   :  { %v6610_v4 = vpop.eup %6609 }
 0x635   :  { %v6612_v20 = vpop.eup %6611  ;;  %v5577_v21 = vpack.c.bf16 %v6610_v4, %v6606_v18 }
 0x636   :  { %v6614_v7 = vpop.eup %6613  ;;  %v5578_v22 = vpack.c.bf16 %v6612_v20, %v6608_v19 }
 0x637   :  { %v6616_v23 = vpop.eup %6615  ;;  %4926 = vst [vmem:[#allocation13] sm:$0xff] %v5577_v21  ;;  %v5601_v3 = vpop.f32.mrb[16].mxu0 }
 0x638   :  { %v6618_v24 = vpop.eup %6617  ;;  %4927 = vst [vmem:[#allocation13 + $0x8] sm:$0xff] %v5578_v22  ;;  %v5602_v25 = vpop.f32.mrb[17].mxu0 }
 0x639   :  { %v6620_v26 = vpop.eup %6619  ;;  %v5581_v27 = vpack.c.bf16 %v6618_v24, %v6614_v7  ;;  %v5603_v28 = vadd.f32 %v5602_v25, %v5601_v3  ;;  %v5604_v29 = vpop.f32.mrb[18].mxu0 }
 0x63a   :  { %v5582_v30 = vpack.c.bf16 %v6620_v26, %v6616_v23  ;;  %v5605_v31 = vpop.f32.mrb[19].mxu0 }
 0x63b   :  { %4930 = vst [vmem:[#allocation13 + $0x1c] sm:$0xff] %v5581_v27  ;;  %v5606_v32 = vadd.f32 %v5605_v31, %v5604_v29 }
 0x63c   :  { %4931 = vst [vmem:[#allocation13 + $0x24] sm:$0xff] %v5582_v30 }
 0x657   :  { %v5623_v33 = vpop.f32.mrb[20].mxu0 }
 0x658   :  { %v5624_v34 = vpop.f32.mrb[21].mxu0 }
 0x659   :  { %v5625_v35 = vadd.f32 %v5624_v34, %v5623_v33  ;;  %v5626_v36 = vpop.f32.mrb[22].mxu0 }
 0x65a   :  { %v5627_v37 = vpop.f32.mrb[23].mxu0 }
 0x65b   :  { %v4806_v38 = vadd.f32 %v5625_v35, %v5603_v28  ;;  %v5628_v39 = vadd.f32 %v5627_v37, %v5626_v36 }
 0x65d   :  { %v4818_v40 = vsub.f32 0.0, %v4806_v38  ;;  %v4809_v41 = vadd.f32 %v5628_v39, %v5606_v32 }
 0x65f   :  { %v4838_v42 = vmul.f32 1.442695, %v4818_v40  ;;  %v4825_v43 = vsub.f32 0.0, %v4809_v41 }
 0x661   :  { %6621 = vpow2.f32 %v4838_v42  ;;  %v4852_v44 = vmul.f32 1.442695, %v4825_v43 }
 0x663   :  { %6623 = vpow2.f32 %v4852_v44 }
 0x66b   :  { %v6622_v45 = vpop.eup %6621 }
 0x66c   :  { %v4860_v46 = vadd.f32 1.0, %v6622_v45 }
 0x66d   :  { %v6624_v47 = vpop.eup %6623 }
 0x66e   :  { %6625 = vrcp.f32 %v4860_v46  ;;  %v4867_v48 = vadd.f32 1.0, %v6624_v47 }
 0x670   :  { %6627 = vrcp.f32 %v4867_v48 }
 0x678   :  { %v6626_v49 = vpop.eup %6625 }
 0x679   :  { %v5580_v50 = vpack.c.bf16 %v6626_v49, %v6626_v49 }
 0x67a   :  { %v6628_v51 = vpop.eup %6627 }
 0x67b   :  { %4929 = vst [vmem:[#allocation13 + $0x18] sm:$0xf] %v5580_v50  ;;  %v5584_v52 = vpack.c.bf16 %v6628_v51, %v6628_v51 }
 0x67d   :  { %4933 = vst [vmem:[#allocation13 + $0x34] sm:$0xf] %v5584_v52 }
 0x696   :  { %v4721_v53 = vpop.f32.mrb[16].mxu1 }
 0x697   :  { %v4816_v54 = vsub.f32 0.0, %v4721_v53  ;;  %v4723_v55 = vpop.f32.mrb[17].mxu1 }
 0x698   :  { %v4817_v56 = vsub.f32 0.0, %v4723_v55  ;;  %v4725_v11 = vpop.f32.mrb[18].mxu1 }
 0x699   :  { %v4834_v58 = vmul.f32 1.442695, %v4816_v54  ;;  %v4823_v59 = vsub.f32 0.0, %v4725_v11  ;;  %v4727_v60 = vpop.f32.mrb[19].mxu1 }
 0x69a   :  { %v4836_v61 = vmul.f32 1.442695, %v4817_v56  ;;  %v4824_v62 = vsub.f32 0.0, %v4727_v60 }
 0x69b   :  { %6629 = vpow2.f32 %v4834_v58  ;;  %v4848_v63 = vmul.f32 1.442695, %v4823_v59 }
 0x69c   :  { %6631 = vpow2.f32 %v4836_v61  ;;  %v4850_v0 = vmul.f32 1.442695, %v4824_v62 }
 0x69d   :  { %6633 = vpow2.f32 %v4848_v63 }
 0x69e   :  { %6635 = vpow2.f32 %v4850_v0 }
 0x6a5   :  { %v6630_v1 = vpop.eup %6629 }
 0x6a6   :  { %v6632_v2 = vpop.eup %6631  ;;  %v4858_v5 = vadd.f32 1.0, %v6630_v1 }
 0x6a7   :  { %v6634_v6 = vpop.eup %6633  ;;  %v4859_v8 = vadd.f32 1.0, %v6632_v2 }
 0x6a8   :  { %v6636_v9 = vpop.eup %6635  ;;  %6637 = vrcp.f32 %v4858_v5  ;;  %v4865_v10 = vadd.f32 1.0, %v6634_v6 }
 0x6a9   :  { %6639 = vrcp.f32 %v4859_v8  ;;  %v4866_v12 = vadd.f32 1.0, %v6636_v9 }
 0x6aa   :  { %6641 = vrcp.f32 %v4865_v10 }
 0x6ab   :  { %6643 = vrcp.f32 %v4866_v12 }
 0x6b2   :  { %v6638_v13 = vpop.eup %6637 }
 0x6b3   :  { %v6640_v14 = vpop.eup %6639 }
 0x6b4   :  { %v6642_v15 = vpop.eup %6641  ;;  %v5579_v16 = vpack.c.bf16 %v6640_v14, %v6638_v13 }
 0x6b5   :  { %v6644_v17 = vpop.eup %6643 }
 0x6b6   :  { %4928 = vst [vmem:[#allocation13 + $0x10] sm:$0xff] %v5579_v16  ;;  %v5583_v57 = vpack.c.bf16 %v6644_v17, %v6642_v15 }
 0x6b8   :  { %4932 = vst [vmem:[#allocation13 + $0x2c] sm:$0xff] %v5583_v57 }
 0x6b9   :  { %6788 = shalt.err (!%p6785_p10)
}
 0x6ba   :  { %s6789_s28 = scalar_lea.hbm %s7003_s6, 896 }
 0x6bb   :  { %p6790_p11 = scmp.ne.s32.totalorder %s7003_s6, %s6789_s28  ;;  %p6793_p12 = scmp.lt.u32.totalorder %s6789_s28, %s7003_s6 }
 0x6bd   :  { %p6795_p13 = pnand %p6793_p12, %p6790_p11 }
 0x6bf   :  { %6798 = shalt.err (!%p6795_p13)
}
 0x6c0   :  { %4945 = dma.vmem_to_hbm [thread:$0]  %s4940_s8, 896, %s7003_s6, [#allocation4], %s6816_s3, %s6816_s3, %s6817_s12  }
 0x6c1   :  { %6807 = dma.done.wait [#allocation4], 896  }
 0x6c2   :  { %6808 = vsyncadd [#allocation4], 4294966400 }
 0x6c3   :  { %4949 = vsyncpa [#allocation3], 1 }
 0x6c4   :  { %4950 = vsyncpa [#allocation6], 1 }
 0x6c5   :  { %4951 = vsyncpa [#allocation9], 1 }
 0x6c6   :  { %4952 = vsyncpa [#allocation12], 1 }
 0x6c7   :  { %4953 = vsyncpa [#allocation4], 1 }

</bundles_post_ra>
